<compile_context>
chip_gen: v7x
topology: tpu7x:2x2x1
jax: 0.10.0
libtpu: 0.0.40
codegen_flags: <defaults>
</compile_context>

<pallas_src>
import jax
import jax.numpy as jnp
from jax.experimental import pallas as pl
from jax.experimental.pallas import tpu as pltpu


def _round_up(x, m):
    return ((x + m - 1) // m) * m


def _vmem_plan(T, Bt, Hp, stream_itemsize, w_itemsize, on_tpu, max_chunk=32):
    """Pick the time-chunk length and a VMEM limit from a VMEM budget."""
    phys = 64 * 1024 * 1024          # conservative default (v7x physical VMEM)
    if on_tpu:
        try:
            phys = int(pltpu.get_tpu_info().vmem_capacity_bytes)
        except Exception:
            pass
    budget = phys * 3 // 4           # leave headroom for compiler scratch
    f32b = 4
    resident = Hp * 4 * Hp * w_itemsize * (1 if on_tpu else 2)   # W_hh (Buffered(1) on TPU)
    resident += 2 * 4 * Hp * f32b                                # bias block
    resident += 2 * Bt * Hp * f32b                               # c_n output block
    resident += 2 * Bt * Hp * f32b                               # h/c scratch carries
    per_step = 2 * (Bt * 4 * Hp + Bt * Hp) * stream_itemsize     # gx + out, double-buffered
    stream_budget = max(budget - resident, per_step)
    Tc = int(max(1, min(stream_budget // per_step, max_chunk, T)))
    needed = resident + Tc * per_step
    vmem_limit = int(min(max(needed + 8 * 1024 * 1024, 32 * 1024 * 1024), phys))
    return Tc, vmem_limit


def _make_lstm_kernel(Tc, T, Hp, per_gate):
    """Build the chunked LSTM recurrence kernel (Tc timesteps per grid step)."""
    f32 = jnp.float32

    def sigmoid(x):
        # 1 EUP transcendental instead of exp + reciprocal.
        return 0.5 * jnp.tanh(0.5 * x) + 0.5

    def kernel(gx_ref, whh_ref, bias_ref, out_ref, cN_ref, h_scr, c_scr):
        # grid = (batch_tile, time_chunk); time is the innermost (sequential) axis.
        t = pl.program_id(1)

        @pl.when(t == 0)
        def _():
            h_scr[...] = jnp.zeros_like(h_scr)
            c_scr[...] = jnp.zeros_like(c_scr)

        Bt = h_scr.shape[0]
        whh = whh_ref[...]                                        # resident weight
        bias = jnp.broadcast_to(bias_ref[...], (Bt, 4 * Hp))      # hoisted broadcast

        # Local carries across the unrolled chunk (no per-step scratch traffic).
        h = h_scr[...]        # compute dtype (bf16 on TPU)
        c = c_scr[...]        # f32 cell state

        for s in range(Tc):   # static unroll: all slices compile-time constant
            if per_gate:
                # Per-gate dots bound vreg pressure for large Hp.
                pres = []
                for g in range(4):
                    lo, hi = g * Hp, (g + 1) * Hp
                    pre = (gx_ref[s, :, lo:hi].astype(f32)
                           + bias[:, lo:hi]
                           + jnp.dot(h, whh[:, lo:hi],
                                     preferred_element_type=f32))
                    pres.append(pre)
                i_pre, f_pre, g_pre, o_pre = pres
            else:
                gates = (gx_ref[s].astype(f32) + bias
                         + jnp.dot(h, whh, preferred_element_type=f32))
                i_pre = gates[:, 0 * Hp:1 * Hp]
                f_pre = gates[:, 1 * Hp:2 * Hp]
                g_pre = gates[:, 2 * Hp:3 * Hp]
                o_pre = gates[:, 3 * Hp:4 * Hp]

            i_g = sigmoid(i_pre)
            f_g = sigmoid(f_pre)
            o_g = sigmoid(o_pre)
            g_g = jnp.tanh(g_pre)

            c = f_g * c + i_g * g_g                   # f32 cell accumulation
            h_f32 = o_g * jnp.tanh(c)
            h = h_f32.astype(h_scr.dtype)             # one cast reused for dot + store
            out_ref[s] = h.astype(out_ref.dtype)

            # Capture c_n exactly at global step T-1 (padded trailing steps ignored).
            @pl.when(t * Tc + s == T - 1)
            def _():
                cN_ref[...] = c.astype(cN_ref.dtype)

        # Write the carry back once per chunk.
        h_scr[...] = h
        c_scr[...] = c

    return kernel


def multi_rnn_lstm_forward(x, w_ih, w_hh, b_ih, b_hh):
    """Pallas forward of MultiRNN('LSTM', I, H, num_layers=1, bidirectional=False).

    x     : (B, T, I)  batch_first input (PyTorch convention)
    w_ih  : (4H, I), w_hh : (4H, H), b_ih/b_hh : (4H,)  PyTorch LSTM params
    Returns (output (B, T, H), (h_n (1, B, H), c_n (1, B, H))).
    """
    B, T, I = x.shape
    H = w_hh.shape[1]
    f32 = jnp.float32

    on_tpu = jax.default_backend() == "tpu"
    # bf16 matmul inputs / bf16 streaming only on TPU (MXU-native); f32 elsewhere
    # (avoids unsupported BF16xBF16=F32 dots on the CPU/interpret backend).
    compute_dtype = jnp.bfloat16 if on_tpu else f32
    stream_dtype = compute_dtype

    Bp = _round_up(B, 8)        # sublane-aligned batch
    Hp = _round_up(H, 128)      # lane-aligned hidden (gate slices on vreg bounds)
    # Batch tiles: 2 when possible so v7x's two TensorCores can split the batch.
    nB = 2 if (Bp >= 16 and Bp % 16 == 0) else 1
    Bt = Bp // nB

    Tc, vmem_limit = _vmem_plan(
        T, Bt, Hp,
        stream_itemsize=jnp.dtype(stream_dtype).itemsize,
        w_itemsize=jnp.dtype(compute_dtype).itemsize,
        on_tpu=on_tpu)
    nT = -(-T // Tc)            # ceil-div: ragged T handled by zero-padding gx
    Tp = nT * Tc

    # --- Repack weights: transpose to (in, 4H) and pad each gate block H->Hp so
    #     gate g lives at columns [g*Hp, g*Hp + H).  Zero padding keeps the padded
    #     hidden/cell lanes exactly zero through the whole recurrence.
    def pack_gates(w, in_dim, in_pad):
        wg = jnp.transpose(w.reshape(4, H, in_dim), (0, 2, 1))        # (4, in, H)
        out = jnp.zeros((4, in_pad, Hp), f32).at[:, :in_dim, :H].set(wg)
        return jnp.transpose(out, (1, 0, 2)).reshape(in_pad, 4 * Hp)

    wih_p = pack_gates(w_ih.astype(f32), I, I)                        # (I,  4Hp)
    whh_p = pack_gates(w_hh.astype(f32), H, Hp)                       # (Hp, 4Hp)
    bias = (b_ih + b_hh).astype(f32).reshape(4, H)
    bias_p = jnp.zeros((4, Hp), f32).at[:, :H].set(bias).reshape(1, 4 * Hp)

    # --- Hoisted input projection: one big time-major GEMM (XLA / MXU), f32
    #     accumulation; streamed to the kernel in the (bf16 on TPU) stream dtype.
    #     Bias is added inside the kernel so gx can stay narrow.
    x_p = jnp.pad(x.astype(f32), ((0, Bp - B), (0, 0), (0, 0)))       # (Bp, T, I)
    gx = jnp.einsum('bti,ig->tbg',
                    x_p.astype(compute_dtype), wih_p.astype(compute_dtype),
                    preferred_element_type=f32).astype(stream_dtype)  # (T, Bp, 4Hp)
    if Tp > T:
        gx = jnp.pad(gx, ((0, Tp - T), (0, 0), (0, 0)))

    whh_c = whh_p.astype(compute_dtype)

    # Resident operands: single-buffer on TPU (constant block index -> no need to
    # double-buffer; halves their VMEM footprint, important on v7x's 64 MiB).
    def resident_spec(block_shape):
        idx = lambda b, t: (0,) * len(block_shape)
        if on_tpu:
            try:
                return pl.BlockSpec(block_shape, idx, pipeline_mode=pl.Buffered(1))
            except TypeError:
                pass
        return pl.BlockSpec(block_shape, idx)

    kernel = _make_lstm_kernel(Tc, T, Hp, per_gate=(Hp >= 512))

    out_tmaj, c_last = pl.pallas_call(
        kernel,
        out_shape=(
            jax.ShapeDtypeStruct((Tp, Bp, Hp), stream_dtype),
            jax.ShapeDtypeStruct((Bp, Hp), f32),
        ),
        grid=(nB, nT),
        in_specs=[
            pl.BlockSpec((Tc, Bt, 4 * Hp), lambda b, t: (t, b, 0)),   # gx chunk
            resident_spec((Hp, 4 * Hp)),                              # W_hh (resident)
            resident_spec((1, 4 * Hp)),                               # bias  (resident)
        ],
        out_specs=(
            pl.BlockSpec((Tc, Bt, Hp), lambda b, t: (t, b, 0)),       # hidden states
            pl.BlockSpec((Bt, Hp), lambda b, t: (b, 0)),              # final cell state
        ),
        scratch_shapes=[
            pltpu.VMEM((Bt, Hp), compute_dtype),   # h carry (matmul-ready dtype)
            pltpu.VMEM((Bt, Hp), f32),             # c carry
        ],
        compiler_params=pltpu.CompilerParams(
            dimension_semantics=("parallel", "arbitrary"),  # batch || , time sequential
            vmem_limit_bytes=vmem_limit,
        ),
    )(gx, whh_c, bias_p)

    out = jnp.transpose(out_tmaj[:T, :B, :H], (1, 0, 2)).astype(x.dtype)   # (B,T,H)
    h_n = out_tmaj[T - 1, :B, :H][None].astype(x.dtype)                    # (1,B,H)
    c_n = c_last[:B, :H][None].astype(x.dtype)                             # (1,B,H)
    return out, (h_n, c_n)


def lstm_reference(x, w_ih, w_hh, b_ih, b_hh):
    """Pure-JAX f32 reference (matches torch.nn.LSTM semantics) for self-check."""
    B, T, I = x.shape
    H = w_hh.shape[1]
    bias = b_ih + b_hh

    def step(carry, x_t):
        h, c = carry
        gates = x_t @ w_ih.T + h @ w_hh.T + bias
        i = jax.nn.sigmoid(gates[:, 0:H])
        f = jax.nn.sigmoid(gates[:, H:2 * H])
        g = jnp.tanh(gates[:, 2 * H:3 * H])
        o = jax.nn.sigmoid(gates[:, 3 * H:4 * H])
        c_new = f * c + i * g
        h_new = o * jnp.tanh(c_new)
        return (h_new, c_new), h_new

    h0 = jnp.zeros((B, H), x.dtype)
    c0 = jnp.zeros((B, H), x.dtype)
    (hT, cT), ys = jax.lax.scan(step, (h0, c0), jnp.transpose(x, (1, 0, 2)))
    return jnp.transpose(ys, (1, 0, 2)), (hT[None], cT[None])


if __name__ == "__main__":
    # Small shapes consistent with the module: (batch, seq_len, input_size).
    B, T, I, H = 2, 8, 16, 32
    key = jax.random.PRNGKey(0)
    k_x, k_wih, k_whh, k_bih, k_bhh = jax.random.split(key, 5)

    # Deterministic parameter init (PyTorch default: U(-1/sqrt(H), 1/sqrt(H))).
    bound = 1.0 / jnp.sqrt(jnp.float32(H))
    x = jax.random.normal(k_x, (B, T, I), dtype=jnp.float32)
    w_ih = jax.random.uniform(k_wih, (4 * H, I), jnp.float32, -bound, bound)
    w_hh = jax.random.uniform(k_whh, (4 * H, H), jnp.float32, -bound, bound)
    b_ih = jax.random.uniform(k_bih, (4 * H,), jnp.float32, -bound, bound)
    b_hh = jax.random.uniform(k_bhh, (4 * H,), jnp.float32, -bound, bound)

    out, (h_n, c_n) = multi_rnn_lstm_forward(x, w_ih, w_hh, b_ih, b_hh)
    jax.block_until_ready((out, h_n, c_n))

    ref_out, (ref_h, ref_c) = lstm_reference(x, w_ih, w_hh, b_ih, b_hh)
    assert out.shape == (B, T, H)
    assert h_n.shape == (1, B, H) and c_n.shape == (1, B, H)
    # bf16 matmul inputs / bf16 streaming (TPU) -> loosened tolerance; exact f32 math
    # (tight tolerance) on other backends.
    tol = 2e-2 if jax.default_backend() == "tpu" else 1e-4
    assert jnp.allclose(out, ref_out, atol=tol, rtol=tol)
    assert jnp.allclose(h_n, ref_h, atol=tol, rtol=tol)
    assert jnp.allclose(c_n, ref_c, atol=tol, rtol=tol)

    print("KERNEL_OK")
</pallas_src>

<mosaic_0001>
module attributes {stable_mosaic.version = 11 : i64} {
  func.func @kernel(%arg0: i32, %arg1: i32, %arg2: memref<8x8x512xf32, #tpu.memory_space<vmem>>, %arg3: memref<128x512xf32, #tpu.memory_space<vmem>>, %arg4: memref<1x512xf32, #tpu.memory_space<vmem>>, %arg5: memref<8x8x128xf32, #tpu.memory_space<vmem>>, %arg6: memref<8x128xf32, #tpu.memory_space<vmem>>, %arg7: memref<8x128xf32, #tpu.memory_space<vmem>>, %arg8: memref<8x128xf32, #tpu.memory_space<vmem>>) attributes {dimension_semantics = [#tpu.dimension_semantics<parallel>, #tpu.dimension_semantics<arbitrary>], iteration_bounds = array<i64: 1, 1>, scalar_prefetch = 0 : i64, scratch_operands = 2 : i64, tpu.core_type = #tpu.core_type<tc>, window_params = [{transform_indices = @transform_0, window_bounds = array<i64: 8, 8, 512>}, {pipeline_mode = #tpu.pipeline_mode<synchronous>, transform_indices = @transform_1, window_bounds = array<i64: 128, 512>}, {pipeline_mode = #tpu.pipeline_mode<synchronous>, transform_indices = @transform_2, window_bounds = array<i64: 1, 512>}, {transform_indices = @transform_3, window_bounds = array<i64: 8, 8, 128>}, {transform_indices = @transform_4, window_bounds = array<i64: 8, 128>}]} {
    %c0_i32 = arith.constant 0 : i32
    %0 = arith.cmpi eq, %arg1, %c0_i32 : i32
    %1 = arith.extui %0 : i1 to i32
    %c0_i32_0 = arith.constant 0 : i32
    %2 = arith.cmpi ne, %1, %c0_i32_0 : i32
    scf.if %2 {
      %cst_156 = arith.constant 0.000000e+00 : f32
      %363 = vector.broadcast %cst_156 : f32 to vector<8x128xf32>
      %c0_157 = arith.constant 0 : index
      %c0_158 = arith.constant 0 : index
      %364 = vector.load %arg7[%c0_157, %c0_158] : memref<8x128xf32, #tpu.memory_space<vmem>>, vector<8x128xf32>
      tpu.vector_store %arg7[%c0_157, %c0_158], %363 {strides = array<i32>} : memref<8x128xf32, #tpu.memory_space<vmem>>, vector<8x128xf32>,
      %cst_159 = arith.constant 0.000000e+00 : f32
      %365 = vector.broadcast %cst_159 : f32 to vector<8x128xf32>
      %c0_160 = arith.constant 0 : index
      %c0_161 = arith.constant 0 : index
      %366 = vector.load %arg8[%c0_160, %c0_161] : memref<8x128xf32, #tpu.memory_space<vmem>>, vector<8x128xf32>
      tpu.vector_store %arg8[%c0_160, %c0_161], %365 {strides = array<i32>} : memref<8x128xf32, #tpu.memory_space<vmem>>, vector<8x128xf32>,
    } else {
    }
    %c0 = arith.constant 0 : index
    %c0_1 = arith.constant 0 : index
    %3 = vector.load %arg3[%c0, %c0_1] : memref<128x512xf32, #tpu.memory_space<vmem>>, vector<128x512xf32>
    %c0_2 = arith.constant 0 : index
    %c0_3 = arith.constant 0 : index
    %4 = vector.load %arg4[%c0_2, %c0_3] : memref<1x512xf32, #tpu.memory_space<vmem>>, vector<1x512xf32>
    %5 = vector.shape_cast %4 : vector<1x512xf32> to vector<1x512xf32>
    %6 = vector.broadcast %5 : vector<1x512xf32> to vector<8x512xf32>
    %c0_4 = arith.constant 0 : index
    %c0_5 = arith.constant 0 : index
    %7 = vector.load %arg7[%c0_4, %c0_5] : memref<8x128xf32, #tpu.memory_space<vmem>>, vector<8x128xf32>
    %c0_6 = arith.constant 0 : index
    %c0_7 = arith.constant 0 : index
    %8 = vector.load %arg8[%c0_6, %c0_7] : memref<8x128xf32, #tpu.memory_space<vmem>>, vector<8x128xf32>
    %c0_8 = arith.constant 0 : index
    %c0_9 = arith.constant 0 : index
    %c0_10 = arith.constant 0 : index
    %9 = vector.load %arg2[%c0_8, %c0_9, %c0_10] : memref<8x8x512xf32, #tpu.memory_space<vmem>>, vector<1x8x512xf32>
    %10 = vector.shape_cast %9 : vector<1x8x512xf32> to vector<8x512xf32>
    %11 = arith.addf %10, %6 : vector<8x512xf32>
    %cst = arith.constant dense<0.000000e+00> : vector<8x512xf32>
    %12 = tpu.matmul %7, %3, %cst {dimension_numbers = #tpu.dot_dimension_numbers<[1], [0], [0], [1], [0, 0, 1, 1], [], []>} : vector<8x128xf32>, vector<128x512xf32>, vector<8x512xf32> -> vector<8x512xf32>
    %13 = arith.addf %11, %12 : vector<8x512xf32>
    %14 = vector.extract_strided_slice %13 {offsets = [0, 0], sizes = [8, 128], strides = [1, 1]} : vector<8x512xf32> to vector<8x128xf32>
    %15 = vector.extract_strided_slice %13 {offsets = [0, 128], sizes = [8, 128], strides = [1, 1]} : vector<8x512xf32> to vector<8x128xf32>
    %16 = vector.extract_strided_slice %13 {offsets = [0, 256], sizes = [8, 128], strides = [1, 1]} : vector<8x512xf32> to vector<8x128xf32>
    %17 = vector.extract_strided_slice %13 {offsets = [0, 384], sizes = [8, 128], strides = [1, 1]} : vector<8x512xf32> to vector<8x128xf32>
    %cst_11 = arith.constant 5.000000e-01 : f32
    %18 = vector.broadcast %cst_11 : f32 to vector<8x128xf32>
    %19 = arith.mulf %18, %14 : vector<8x128xf32>
    %20 = math.tanh %19 : vector<8x128xf32>
    %cst_12 = arith.constant 5.000000e-01 : f32
    %21 = vector.broadcast %cst_12 : f32 to vector<8x128xf32>
    %22 = arith.mulf %21, %20 : vector<8x128xf32>
    %cst_13 = arith.constant 5.000000e-01 : f32
    %23 = vector.broadcast %cst_13 : f32 to vector<8x128xf32>
    %24 = arith.addf %22, %23 : vector<8x128xf32>
    %cst_14 = arith.constant 5.000000e-01 : f32
    %25 = vector.broadcast %cst_14 : f32 to vector<8x128xf32>
    %26 = arith.mulf %25, %15 : vector<8x128xf32>
    %27 = math.tanh %26 : vector<8x128xf32>
    %cst_15 = arith.constant 5.000000e-01 : f32
    %28 = vector.broadcast %cst_15 : f32 to vector<8x128xf32>
    %29 = arith.mulf %28, %27 : vector<8x128xf32>
    %cst_16 = arith.constant 5.000000e-01 : f32
    %30 = vector.broadcast %cst_16 : f32 to vector<8x128xf32>
    %31 = arith.addf %29, %30 : vector<8x128xf32>
    %cst_17 = arith.constant 5.000000e-01 : f32
    %32 = vector.broadcast %cst_17 : f32 to vector<8x128xf32>
    %33 = arith.mulf %32, %17 : vector<8x128xf32>
    %34 = math.tanh %33 : vector<8x128xf32>
    %cst_18 = arith.constant 5.000000e-01 : f32
    %35 = vector.broadcast %cst_18 : f32 to vector<8x128xf32>
    %36 = arith.mulf %35, %34 : vector<8x128xf32>
    %cst_19 = arith.constant 5.000000e-01 : f32
    %37 = vector.broadcast %cst_19 : f32 to vector<8x128xf32>
    %38 = arith.addf %36, %37 : vector<8x128xf32>
    %39 = math.tanh %16 : vector<8x128xf32>
    %40 = arith.mulf %31, %8 : vector<8x128xf32>
    %41 = arith.mulf %24, %39 : vector<8x128xf32>
    %42 = arith.addf %40, %41 : vector<8x128xf32>
    %43 = math.tanh %42 : vector<8x128xf32>
    %44 = arith.mulf %38, %43 : vector<8x128xf32>
    %c0_20 = arith.constant 0 : index
    %c0_21 = arith.constant 0 : index
    %c0_22 = arith.constant 0 : index
    %45 = vector.load %arg5[%c0_20, %c0_21, %c0_22] : memref<8x8x128xf32, #tpu.memory_space<vmem>>, vector<1x8x128xf32>
    %46 = vector.shape_cast %45 : vector<1x8x128xf32> to vector<8x128xf32>
    %47 = vector.shape_cast %44 : vector<8x128xf32> to vector<1x8x128xf32>
    tpu.vector_store %arg5[%c0_20, %c0_21, %c0_22], %47 {strides = array<i32>} : memref<8x8x128xf32, #tpu.memory_space<vmem>>, vector<1x8x128xf32>,
    %c8_i32 = arith.constant 8 : i32
    %48 = arith.muli %arg1, %c8_i32 : i32
    %c0_i32_23 = arith.constant 0 : i32
    %49 = arith.addi %48, %c0_i32_23 : i32
    %c7_i32 = arith.constant 7 : i32
    %50 = arith.cmpi eq, %49, %c7_i32 : i32
    %51 = arith.extui %50 : i1 to i32
    %c0_i32_24 = arith.constant 0 : i32
    %52 = arith.cmpi ne, %51, %c0_i32_24 : i32
    scf.if %52 {
      %c0_156 = arith.constant 0 : index
      %c0_157 = arith.constant 0 : index
      %363 = vector.load %arg6[%c0_156, %c0_157] : memref<8x128xf32, #tpu.memory_space<vmem>>, vector<8x128xf32>
      tpu.vector_store %arg6[%c0_156, %c0_157], %42 {strides = array<i32>} : memref<8x128xf32, #tpu.memory_space<vmem>>, vector<8x128xf32>,
    } else {
    }
    %c1 = arith.constant 1 : index
    %c0_25 = arith.constant 0 : index
    %c0_26 = arith.constant 0 : index
    %53 = vector.load %arg2[%c1, %c0_25, %c0_26] : memref<8x8x512xf32, #tpu.memory_space<vmem>>, vector<1x8x512xf32>
    %54 = vector.shape_cast %53 : vector<1x8x512xf32> to vector<8x512xf32>
    %55 = arith.addf %54, %6 : vector<8x512xf32>
    %cst_27 = arith.constant dense<0.000000e+00> : vector<8x512xf32>
    %56 = tpu.matmul %44, %3, %cst_27 {dimension_numbers = #tpu.dot_dimension_numbers<[1], [0], [0], [1], [0, 0, 1, 1], [], []>} : vector<8x128xf32>, vector<128x512xf32>, vector<8x512xf32> -> vector<8x512xf32>
    %57 = arith.addf %55, %56 : vector<8x512xf32>
    %58 = vector.extract_strided_slice %57 {offsets = [0, 0], sizes = [8, 128], strides = [1, 1]} : vector<8x512xf32> to vector<8x128xf32>
    %59 = vector.extract_strided_slice %57 {offsets = [0, 128], sizes = [8, 128], strides = [1, 1]} : vector<8x512xf32> to vector<8x128xf32>
    %60 = vector.extract_strided_slice %57 {offsets = [0, 256], sizes = [8, 128], strides = [1, 1]} : vector<8x512xf32> to vector<8x128xf32>
    %61 = vector.extract_strided_slice %57 {offsets = [0, 384], sizes = [8, 128], strides = [1, 1]} : vector<8x512xf32> to vector<8x128xf32>
    %cst_28 = arith.constant 5.000000e-01 : f32
    %62 = vector.broadcast %cst_28 : f32 to vector<8x128xf32>
    %63 = arith.mulf %62, %58 : vector<8x128xf32>
    %64 = math.tanh %63 : vector<8x128xf32>
    %cst_29 = arith.constant 5.000000e-01 : f32
    %65 = vector.broadcast %cst_29 : f32 to vector<8x128xf32>
    %66 = arith.mulf %65, %64 : vector<8x128xf32>
    %cst_30 = arith.constant 5.000000e-01 : f32
    %67 = vector.broadcast %cst_30 : f32 to vector<8x128xf32>
    %68 = arith.addf %66, %67 : vector<8x128xf32>
    %cst_31 = arith.constant 5.000000e-01 : f32
    %69 = vector.broadcast %cst_31 : f32 to vector<8x128xf32>
    %70 = arith.mulf %69, %59 : vector<8x128xf32>
    %71 = math.tanh %70 : vector<8x128xf32>
    %cst_32 = arith.constant 5.000000e-01 : f32
    %72 = vector.broadcast %cst_32 : f32 to vector<8x128xf32>
    %73 = arith.mulf %72, %71 : vector<8x128xf32>
    %cst_33 = arith.constant 5.000000e-01 : f32
    %74 = vector.broadcast %cst_33 : f32 to vector<8x128xf32>
    %75 = arith.addf %73, %74 : vector<8x128xf32>
    %cst_34 = arith.constant 5.000000e-01 : f32
    %76 = vector.broadcast %cst_34 : f32 to vector<8x128xf32>
    %77 = arith.mulf %76, %61 : vector<8x128xf32>
    %78 = math.tanh %77 : vector<8x128xf32>
    %cst_35 = arith.constant 5.000000e-01 : f32
    %79 = vector.broadcast %cst_35 : f32 to vector<8x128xf32>
    %80 = arith.mulf %79, %78 : vector<8x128xf32>
    %cst_36 = arith.constant 5.000000e-01 : f32
    %81 = vector.broadcast %cst_36 : f32 to vector<8x128xf32>
    %82 = arith.addf %80, %81 : vector<8x128xf32>
    %83 = math.tanh %60 : vector<8x128xf32>
    %84 = arith.mulf %75, %42 : vector<8x128xf32>
    %85 = arith.mulf %68, %83 : vector<8x128xf32>
    %86 = arith.addf %84, %85 : vector<8x128xf32>
    %87 = math.tanh %86 : vector<8x128xf32>
    %88 = arith.mulf %82, %87 : vector<8x128xf32>
    %c1_37 = arith.constant 1 : index
    %c0_38 = arith.constant 0 : index
    %c0_39 = arith.constant 0 : index
    %89 = vector.load %arg5[%c1_37, %c0_38, %c0_39] : memref<8x8x128xf32, #tpu.memory_space<vmem>>, vector<1x8x128xf32>
    %90 = vector.shape_cast %89 : vector<1x8x128xf32> to vector<8x128xf32>
    %91 = vector.shape_cast %88 : vector<8x128xf32> to vector<1x8x128xf32>
    tpu.vector_store %arg5[%c1_37, %c0_38, %c0_39], %91 {strides = array<i32>} : memref<8x8x128xf32, #tpu.memory_space<vmem>>, vector<1x8x128xf32>,
    %c8_i32_40 = arith.constant 8 : i32
    %92 = arith.muli %arg1, %c8_i32_40 : i32
    %c1_i32 = arith.constant 1 : i32
    %93 = arith.addi %92, %c1_i32 : i32
    %c7_i32_41 = arith.constant 7 : i32
    %94 = arith.cmpi eq, %93, %c7_i32_41 : i32
    %95 = arith.extui %94 : i1 to i32
    %c0_i32_42 = arith.constant 0 : i32
    %96 = arith.cmpi ne, %95, %c0_i32_42 : i32
    scf.if %96 {
      %c0_156 = arith.constant 0 : index
      %c0_157 = arith.constant 0 : index
      %363 = vector.load %arg6[%c0_156, %c0_157] : memref<8x128xf32, #tpu.memory_space<vmem>>, vector<8x128xf32>
      tpu.vector_store %arg6[%c0_156, %c0_157], %86 {strides = array<i32>} : memref<8x128xf32, #tpu.memory_space<vmem>>, vector<8x128xf32>,
    } else {
    }
    %c2 = arith.constant 2 : index
    %c0_43 = arith.constant 0 : index
    %c0_44 = arith.constant 0 : index
    %97 = vector.load %arg2[%c2, %c0_43, %c0_44] : memref<8x8x512xf32, #tpu.memory_space<vmem>>, vector<1x8x512xf32>
    %98 = vector.shape_cast %97 : vector<1x8x512xf32> to vector<8x512xf32>
    %99 = arith.addf %98, %6 : vector<8x512xf32>
    %cst_45 = arith.constant dense<0.000000e+00> : vector<8x512xf32>
    %100 = tpu.matmul %88, %3, %cst_45 {dimension_numbers = #tpu.dot_dimension_numbers<[1], [0], [0], [1], [0, 0, 1, 1], [], []>} : vector<8x128xf32>, vector<128x512xf32>, vector<8x512xf32> -> vector<8x512xf32>
    %101 = arith.addf %99, %100 : vector<8x512xf32>
    %102 = vector.extract_strided_slice %101 {offsets = [0, 0], sizes = [8, 128], strides = [1, 1]} : vector<8x512xf32> to vector<8x128xf32>
    %103 = vector.extract_strided_slice %101 {offsets = [0, 128], sizes = [8, 128], strides = [1, 1]} : vector<8x512xf32> to vector<8x128xf32>
    %104 = vector.extract_strided_slice %101 {offsets = [0, 256], sizes = [8, 128], strides = [1, 1]} : vector<8x512xf32> to vector<8x128xf32>
    %105 = vector.extract_strided_slice %101 {offsets = [0, 384], sizes = [8, 128], strides = [1, 1]} : vector<8x512xf32> to vector<8x128xf32>
    %cst_46 = arith.constant 5.000000e-01 : f32
    %106 = vector.broadcast %cst_46 : f32 to vector<8x128xf32>
    %107 = arith.mulf %106, %102 : vector<8x128xf32>
    %108 = math.tanh %107 : vector<8x128xf32>
    %cst_47 = arith.constant 5.000000e-01 : f32
    %109 = vector.broadcast %cst_47 : f32 to vector<8x128xf32>
    %110 = arith.mulf %109, %108 : vector<8x128xf32>
    %cst_48 = arith.constant 5.000000e-01 : f32
    %111 = vector.broadcast %cst_48 : f32 to vector<8x128xf32>
    %112 = arith.addf %110, %111 : vector<8x128xf32>
    %cst_49 = arith.constant 5.000000e-01 : f32
    %113 = vector.broadcast %cst_49 : f32 to vector<8x128xf32>
    %114 = arith.mulf %113, %103 : vector<8x128xf32>
    %115 = math.tanh %114 : vector<8x128xf32>
    %cst_50 = arith.constant 5.000000e-01 : f32
    %116 = vector.broadcast %cst_50 : f32 to vector<8x128xf32>
    %117 = arith.mulf %116, %115 : vector<8x128xf32>
    %cst_51 = arith.constant 5.000000e-01 : f32
    %118 = vector.broadcast %cst_51 : f32 to vector<8x128xf32>
    %119 = arith.addf %117, %118 : vector<8x128xf32>
    %cst_52 = arith.constant 5.000000e-01 : f32
    %120 = vector.broadcast %cst_52 : f32 to vector<8x128xf32>
    %121 = arith.mulf %120, %105 : vector<8x128xf32>
    %122 = math.tanh %121 : vector<8x128xf32>
    %cst_53 = arith.constant 5.000000e-01 : f32
    %123 = vector.broadcast %cst_53 : f32 to vector<8x128xf32>
    %124 = arith.mulf %123, %122 : vector<8x128xf32>
    %cst_54 = arith.constant 5.000000e-01 : f32
    %125 = vector.broadcast %cst_54 : f32 to vector<8x128xf32>
    %126 = arith.addf %124, %125 : vector<8x128xf32>
    %127 = math.tanh %104 : vector<8x128xf32>
    %128 = arith.mulf %119, %86 : vector<8x128xf32>
    %129 = arith.mulf %112, %127 : vector<8x128xf32>
    %130 = arith.addf %128, %129 : vector<8x128xf32>
    %131 = math.tanh %130 : vector<8x128xf32>
    %132 = arith.mulf %126, %131 : vector<8x128xf32>
    %c2_55 = arith.constant 2 : index
    %c0_56 = arith.constant 0 : index
    %c0_57 = arith.constant 0 : index
    %133 = vector.load %arg5[%c2_55, %c0_56, %c0_57] : memref<8x8x128xf32, #tpu.memory_space<vmem>>, vector<1x8x128xf32>
    %134 = vector.shape_cast %133 : vector<1x8x128xf32> to vector<8x128xf32>
    %135 = vector.shape_cast %132 : vector<8x128xf32> to vector<1x8x128xf32>
    tpu.vector_store %arg5[%c2_55, %c0_56, %c0_57], %135 {strides = array<i32>} : memref<8x8x128xf32, #tpu.memory_space<vmem>>, vector<1x8x128xf32>,
    %c8_i32_58 = arith.constant 8 : i32
    %136 = arith.muli %arg1, %c8_i32_58 : i32
    %c2_i32 = arith.constant 2 : i32
    %137 = arith.addi %136, %c2_i32 : i32
    %c7_i32_59 = arith.constant 7 : i32
    %138 = arith.cmpi eq, %137, %c7_i32_59 : i32
    %139 = arith.extui %138 : i1 to i32
    %c0_i32_60 = arith.constant 0 : i32
    %140 = arith.cmpi ne, %139, %c0_i32_60 : i32
    scf.if %140 {
      %c0_156 = arith.constant 0 : index
      %c0_157 = arith.constant 0 : index
      %363 = vector.load %arg6[%c0_156, %c0_157] : memref<8x128xf32, #tpu.memory_space<vmem>>, vector<8x128xf32>
      tpu.vector_store %arg6[%c0_156, %c0_157], %130 {strides = array<i32>} : memref<8x128xf32, #tpu.memory_space<vmem>>, vector<8x128xf32>,
    } else {
    }
    %c3 = arith.constant 3 : index
    %c0_61 = arith.constant 0 : index
    %c0_62 = arith.constant 0 : index
    %141 = vector.load %arg2[%c3, %c0_61, %c0_62] : memref<8x8x512xf32, #tpu.memory_space<vmem>>, vector<1x8x512xf32>
    %142 = vector.shape_cast %141 : vector<1x8x512xf32> to vector<8x512xf32>
    %143 = arith.addf %142, %6 : vector<8x512xf32>
    %cst_63 = arith.constant dense<0.000000e+00> : vector<8x512xf32>
    %144 = tpu.matmul %132, %3, %cst_63 {dimension_numbers = #tpu.dot_dimension_numbers<[1], [0], [0], [1], [0, 0, 1, 1], [], []>} : vector<8x128xf32>, vector<128x512xf32>, vector<8x512xf32> -> vector<8x512xf32>
    %145 = arith.addf %143, %144 : vector<8x512xf32>
    %146 = vector.extract_strided_slice %145 {offsets = [0, 0], sizes = [8, 128], strides = [1, 1]} : vector<8x512xf32> to vector<8x128xf32>
    %147 = vector.extract_strided_slice %145 {offsets = [0, 128], sizes = [8, 128], strides = [1, 1]} : vector<8x512xf32> to vector<8x128xf32>
    %148 = vector.extract_strided_slice %145 {offsets = [0, 256], sizes = [8, 128], strides = [1, 1]} : vector<8x512xf32> to vector<8x128xf32>
    %149 = vector.extract_strided_slice %145 {offsets = [0, 384], sizes = [8, 128], strides = [1, 1]} : vector<8x512xf32> to vector<8x128xf32>
    %cst_64 = arith.constant 5.000000e-01 : f32
    %150 = vector.broadcast %cst_64 : f32 to vector<8x128xf32>
    %151 = arith.mulf %150, %146 : vector<8x128xf32>
    %152 = math.tanh %151 : vector<8x128xf32>
    %cst_65 = arith.constant 5.000000e-01 : f32
    %153 = vector.broadcast %cst_65 : f32 to vector<8x128xf32>
    %154 = arith.mulf %153, %152 : vector<8x128xf32>
    %cst_66 = arith.constant 5.000000e-01 : f32
    %155 = vector.broadcast %cst_66 : f32 to vector<8x128xf32>
    %156 = arith.addf %154, %155 : vector<8x128xf32>
    %cst_67 = arith.constant 5.000000e-01 : f32
    %157 = vector.broadcast %cst_67 : f32 to vector<8x128xf32>
    %158 = arith.mulf %157, %147 : vector<8x128xf32>
    %159 = math.tanh %158 : vector<8x128xf32>
    %cst_68 = arith.constant 5.000000e-01 : f32
    %160 = vector.broadcast %cst_68 : f32 to vector<8x128xf32>
    %161 = arith.mulf %160, %159 : vector<8x128xf32>
    %cst_69 = arith.constant 5.000000e-01 : f32
    %162 = vector.broadcast %cst_69 : f32 to vector<8x128xf32>
    %163 = arith.addf %161, %162 : vector<8x128xf32>
    %cst_70 = arith.constant 5.000000e-01 : f32
    %164 = vector.broadcast %cst_70 : f32 to vector<8x128xf32>
    %165 = arith.mulf %164, %149 : vector<8x128xf32>
    %166 = math.tanh %165 : vector<8x128xf32>
    %cst_71 = arith.constant 5.000000e-01 : f32
    %167 = vector.broadcast %cst_71 : f32 to vector<8x128xf32>
    %168 = arith.mulf %167, %166 : vector<8x128xf32>
    %cst_72 = arith.constant 5.000000e-01 : f32
    %169 = vector.broadcast %cst_72 : f32 to vector<8x128xf32>
    %170 = arith.addf %168, %169 : vector<8x128xf32>
    %171 = math.tanh %148 : vector<8x128xf32>
    %172 = arith.mulf %163, %130 : vector<8x128xf32>
    %173 = arith.mulf %156, %171 : vector<8x128xf32>
    %174 = arith.addf %172, %173 : vector<8x128xf32>
    %175 = math.tanh %174 : vector<8x128xf32>
    %176 = arith.mulf %170, %175 : vector<8x128xf32>
    %c3_73 = arith.constant 3 : index
    %c0_74 = arith.constant 0 : index
    %c0_75 = arith.constant 0 : index
    %177 = vector.load %arg5[%c3_73, %c0_74, %c0_75] : memref<8x8x128xf32, #tpu.memory_space<vmem>>, vector<1x8x128xf32>
    %178 = vector.shape_cast %177 : vector<1x8x128xf32> to vector<8x128xf32>
    %179 = vector.shape_cast %176 : vector<8x128xf32> to vector<1x8x128xf32>
    tpu.vector_store %arg5[%c3_73, %c0_74, %c0_75], %179 {strides = array<i32>} : memref<8x8x128xf32, #tpu.memory_space<vmem>>, vector<1x8x128xf32>,
    %c8_i32_76 = arith.constant 8 : i32
    %180 = arith.muli %arg1, %c8_i32_76 : i32
    %c3_i32 = arith.constant 3 : i32
    %181 = arith.addi %180, %c3_i32 : i32
    %c7_i32_77 = arith.constant 7 : i32
    %182 = arith.cmpi eq, %181, %c7_i32_77 : i32
    %183 = arith.extui %182 : i1 to i32
    %c0_i32_78 = arith.constant 0 : i32
    %184 = arith.cmpi ne, %183, %c0_i32_78 : i32
    scf.if %184 {
      %c0_156 = arith.constant 0 : index
      %c0_157 = arith.constant 0 : index
      %363 = vector.load %arg6[%c0_156, %c0_157] : memref<8x128xf32, #tpu.memory_space<vmem>>, vector<8x128xf32>
      tpu.vector_store %arg6[%c0_156, %c0_157], %174 {strides = array<i32>} : memref<8x128xf32, #tpu.memory_space<vmem>>, vector<8x128xf32>,
    } else {
    }
    %c4 = arith.constant 4 : index
    %c0_79 = arith.constant 0 : index
    %c0_80 = arith.constant 0 : index
    %185 = vector.load %arg2[%c4, %c0_79, %c0_80] : memref<8x8x512xf32, #tpu.memory_space<vmem>>, vector<1x8x512xf32>
    %186 = vector.shape_cast %185 : vector<1x8x512xf32> to vector<8x512xf32>
    %187 = arith.addf %186, %6 : vector<8x512xf32>
    %cst_81 = arith.constant dense<0.000000e+00> : vector<8x512xf32>
    %188 = tpu.matmul %176, %3, %cst_81 {dimension_numbers = #tpu.dot_dimension_numbers<[1], [0], [0], [1], [0, 0, 1, 1], [], []>} : vector<8x128xf32>, vector<128x512xf32>, vector<8x512xf32> -> vector<8x512xf32>
    %189 = arith.addf %187, %188 : vector<8x512xf32>
    %190 = vector.extract_strided_slice %189 {offsets = [0, 0], sizes = [8, 128], strides = [1, 1]} : vector<8x512xf32> to vector<8x128xf32>
    %191 = vector.extract_strided_slice %189 {offsets = [0, 128], sizes = [8, 128], strides = [1, 1]} : vector<8x512xf32> to vector<8x128xf32>
    %192 = vector.extract_strided_slice %189 {offsets = [0, 256], sizes = [8, 128], strides = [1, 1]} : vector<8x512xf32> to vector<8x128xf32>
    %193 = vector.extract_strided_slice %189 {offsets = [0, 384], sizes = [8, 128], strides = [1, 1]} : vector<8x512xf32> to vector<8x128xf32>
    %cst_82 = arith.constant 5.000000e-01 : f32
    %194 = vector.broadcast %cst_82 : f32 to vector<8x128xf32>
    %195 = arith.mulf %194, %190 : vector<8x128xf32>
    %196 = math.tanh %195 : vector<8x128xf32>
    %cst_83 = arith.constant 5.000000e-01 : f32
    %197 = vector.broadcast %cst_83 : f32 to vector<8x128xf32>
    %198 = arith.mulf %197, %196 : vector<8x128xf32>
    %cst_84 = arith.constant 5.000000e-01 : f32
    %199 = vector.broadcast %cst_84 : f32 to vector<8x128xf32>
    %200 = arith.addf %198, %199 : vector<8x128xf32>
    %cst_85 = arith.constant 5.000000e-01 : f32
    %201 = vector.broadcast %cst_85 : f32 to vector<8x128xf32>
    %202 = arith.mulf %201, %191 : vector<8x128xf32>
    %203 = math.tanh %202 : vector<8x128xf32>
    %cst_86 = arith.constant 5.000000e-01 : f32
    %204 = vector.broadcast %cst_86 : f32 to vector<8x128xf32>
    %205 = arith.mulf %204, %203 : vector<8x128xf32>
    %cst_87 = arith.constant 5.000000e-01 : f32
    %206 = vector.broadcast %cst_87 : f32 to vector<8x128xf32>
    %207 = arith.addf %205, %206 : vector<8x128xf32>
    %cst_88 = arith.constant 5.000000e-01 : f32
    %208 = vector.broadcast %cst_88 : f32 to vector<8x128xf32>
    %209 = arith.mulf %208, %193 : vector<8x128xf32>
    %210 = math.tanh %209 : vector<8x128xf32>
    %cst_89 = arith.constant 5.000000e-01 : f32
    %211 = vector.broadcast %cst_89 : f32 to vector<8x128xf32>
    %212 = arith.mulf %211, %210 : vector<8x128xf32>
    %cst_90 = arith.constant 5.000000e-01 : f32
    %213 = vector.broadcast %cst_90 : f32 to vector<8x128xf32>
    %214 = arith.addf %212, %213 : vector<8x128xf32>
    %215 = math.tanh %192 : vector<8x128xf32>
    %216 = arith.mulf %207, %174 : vector<8x128xf32>
    %217 = arith.mulf %200, %215 : vector<8x128xf32>
    %218 = arith.addf %216, %217 : vector<8x128xf32>
    %219 = math.tanh %218 : vector<8x128xf32>
    %220 = arith.mulf %214, %219 : vector<8x128xf32>
    %c4_91 = arith.constant 4 : index
    %c0_92 = arith.constant 0 : index
    %c0_93 = arith.constant 0 : index
    %221 = vector.load %arg5[%c4_91, %c0_92, %c0_93] : memref<8x8x128xf32, #tpu.memory_space<vmem>>, vector<1x8x128xf32>
    %222 = vector.shape_cast %221 : vector<1x8x128xf32> to vector<8x128xf32>
    %223 = vector.shape_cast %220 : vector<8x128xf32> to vector<1x8x128xf32>
    tpu.vector_store %arg5[%c4_91, %c0_92, %c0_93], %223 {strides = array<i32>} : memref<8x8x128xf32, #tpu.memory_space<vmem>>, vector<1x8x128xf32>,
    %c8_i32_94 = arith.constant 8 : i32
    %224 = arith.muli %arg1, %c8_i32_94 : i32
    %c4_i32 = arith.constant 4 : i32
    %225 = arith.addi %224, %c4_i32 : i32
    %c7_i32_95 = arith.constant 7 : i32
    %226 = arith.cmpi eq, %225, %c7_i32_95 : i32
    %227 = arith.extui %226 : i1 to i32
    %c0_i32_96 = arith.constant 0 : i32
    %228 = arith.cmpi ne, %227, %c0_i32_96 : i32
    scf.if %228 {
      %c0_156 = arith.constant 0 : index
      %c0_157 = arith.constant 0 : index
      %363 = vector.load %arg6[%c0_156, %c0_157] : memref<8x128xf32, #tpu.memory_space<vmem>>, vector<8x128xf32>
      tpu.vector_store %arg6[%c0_156, %c0_157], %218 {strides = array<i32>} : memref<8x128xf32, #tpu.memory_space<vmem>>, vector<8x128xf32>,
    } else {
    }
    %c5 = arith.constant 5 : index
    %c0_97 = arith.constant 0 : index
    %c0_98 = arith.constant 0 : index
    %229 = vector.load %arg2[%c5, %c0_97, %c0_98] : memref<8x8x512xf32, #tpu.memory_space<vmem>>, vector<1x8x512xf32>
    %230 = vector.shape_cast %229 : vector<1x8x512xf32> to vector<8x512xf32>
    %231 = arith.addf %230, %6 : vector<8x512xf32>
    %cst_99 = arith.constant dense<0.000000e+00> : vector<8x512xf32>
    %232 = tpu.matmul %220, %3, %cst_99 {dimension_numbers = #tpu.dot_dimension_numbers<[1], [0], [0], [1], [0, 0, 1, 1], [], []>} : vector<8x128xf32>, vector<128x512xf32>, vector<8x512xf32> -> vector<8x512xf32>
    %233 = arith.addf %231, %232 : vector<8x512xf32>
    %234 = vector.extract_strided_slice %233 {offsets = [0, 0], sizes = [8, 128], strides = [1, 1]} : vector<8x512xf32> to vector<8x128xf32>
    %235 = vector.extract_strided_slice %233 {offsets = [0, 128], sizes = [8, 128], strides = [1, 1]} : vector<8x512xf32> to vector<8x128xf32>
    %236 = vector.extract_strided_slice %233 {offsets = [0, 256], sizes = [8, 128], strides = [1, 1]} : vector<8x512xf32> to vector<8x128xf32>
    %237 = vector.extract_strided_slice %233 {offsets = [0, 384], sizes = [8, 128], strides = [1, 1]} : vector<8x512xf32> to vector<8x128xf32>
    %cst_100 = arith.constant 5.000000e-01 : f32
    %238 = vector.broadcast %cst_100 : f32 to vector<8x128xf32>
    %239 = arith.mulf %238, %234 : vector<8x128xf32>
    %240 = math.tanh %239 : vector<8x128xf32>
    %cst_101 = arith.constant 5.000000e-01 : f32
    %241 = vector.broadcast %cst_101 : f32 to vector<8x128xf32>
    %242 = arith.mulf %241, %240 : vector<8x128xf32>
    %cst_102 = arith.constant 5.000000e-01 : f32
    %243 = vector.broadcast %cst_102 : f32 to vector<8x128xf32>
    %244 = arith.addf %242, %243 : vector<8x128xf32>
    %cst_103 = arith.constant 5.000000e-01 : f32
    %245 = vector.broadcast %cst_103 : f32 to vector<8x128xf32>
    %246 = arith.mulf %245, %235 : vector<8x128xf32>
    %247 = math.tanh %246 : vector<8x128xf32>
    %cst_104 = arith.constant 5.000000e-01 : f32
    %248 = vector.broadcast %cst_104 : f32 to vector<8x128xf32>
    %249 = arith.mulf %248, %247 : vector<8x128xf32>
    %cst_105 = arith.constant 5.000000e-01 : f32
    %250 = vector.broadcast %cst_105 : f32 to vector<8x128xf32>
    %251 = arith.addf %249, %250 : vector<8x128xf32>
    %cst_106 = arith.constant 5.000000e-01 : f32
    %252 = vector.broadcast %cst_106 : f32 to vector<8x128xf32>
    %253 = arith.mulf %252, %237 : vector<8x128xf32>
    %254 = math.tanh %253 : vector<8x128xf32>
    %cst_107 = arith.constant 5.000000e-01 : f32
    %255 = vector.broadcast %cst_107 : f32 to vector<8x128xf32>
    %256 = arith.mulf %255, %254 : vector<8x128xf32>
    %cst_108 = arith.constant 5.000000e-01 : f32
    %257 = vector.broadcast %cst_108 : f32 to vector<8x128xf32>
    %258 = arith.addf %256, %257 : vector<8x128xf32>
    %259 = math.tanh %236 : vector<8x128xf32>
    %260 = arith.mulf %251, %218 : vector<8x128xf32>
    %261 = arith.mulf %244, %259 : vector<8x128xf32>
    %262 = arith.addf %260, %261 : vector<8x128xf32>
    %263 = math.tanh %262 : vector<8x128xf32>
    %264 = arith.mulf %258, %263 : vector<8x128xf32>
    %c5_109 = arith.constant 5 : index
    %c0_110 = arith.constant 0 : index
    %c0_111 = arith.constant 0 : index
    %265 = vector.load %arg5[%c5_109, %c0_110, %c0_111] : memref<8x8x128xf32, #tpu.memory_space<vmem>>, vector<1x8x128xf32>
    %266 = vector.shape_cast %265 : vector<1x8x128xf32> to vector<8x128xf32>
    %267 = vector.shape_cast %264 : vector<8x128xf32> to vector<1x8x128xf32>
    tpu.vector_store %arg5[%c5_109, %c0_110, %c0_111], %267 {strides = array<i32>} : memref<8x8x128xf32, #tpu.memory_space<vmem>>, vector<1x8x128xf32>,
    %c8_i32_112 = arith.constant 8 : i32
    %268 = arith.muli %arg1, %c8_i32_112 : i32
    %c5_i32 = arith.constant 5 : i32
    %269 = arith.addi %268, %c5_i32 : i32
    %c7_i32_113 = arith.constant 7 : i32
    %270 = arith.cmpi eq, %269, %c7_i32_113 : i32
    %271 = arith.extui %270 : i1 to i32
    %c0_i32_114 = arith.constant 0 : i32
    %272 = arith.cmpi ne, %271, %c0_i32_114 : i32
    scf.if %272 {
      %c0_156 = arith.constant 0 : index
      %c0_157 = arith.constant 0 : index
      %363 = vector.load %arg6[%c0_156, %c0_157] : memref<8x128xf32, #tpu.memory_space<vmem>>, vector<8x128xf32>
      tpu.vector_store %arg6[%c0_156, %c0_157], %262 {strides = array<i32>} : memref<8x128xf32, #tpu.memory_space<vmem>>, vector<8x128xf32>,
    } else {
    }
    %c6 = arith.constant 6 : index
    %c0_115 = arith.constant 0 : index
    %c0_116 = arith.constant 0 : index
    %273 = vector.load %arg2[%c6, %c0_115, %c0_116] : memref<8x8x512xf32, #tpu.memory_space<vmem>>, vector<1x8x512xf32>
    %274 = vector.shape_cast %273 : vector<1x8x512xf32> to vector<8x512xf32>
    %275 = arith.addf %274, %6 : vector<8x512xf32>
    %cst_117 = arith.constant dense<0.000000e+00> : vector<8x512xf32>
    %276 = tpu.matmul %264, %3, %cst_117 {dimension_numbers = #tpu.dot_dimension_numbers<[1], [0], [0], [1], [0, 0, 1, 1], [], []>} : vector<8x128xf32>, vector<128x512xf32>, vector<8x512xf32> -> vector<8x512xf32>
    %277 = arith.addf %275, %276 : vector<8x512xf32>
    %278 = vector.extract_strided_slice %277 {offsets = [0, 0], sizes = [8, 128], strides = [1, 1]} : vector<8x512xf32> to vector<8x128xf32>
    %279 = vector.extract_strided_slice %277 {offsets = [0, 128], sizes = [8, 128], strides = [1, 1]} : vector<8x512xf32> to vector<8x128xf32>
    %280 = vector.extract_strided_slice %277 {offsets = [0, 256], sizes = [8, 128], strides = [1, 1]} : vector<8x512xf32> to vector<8x128xf32>
    %281 = vector.extract_strided_slice %277 {offsets = [0, 384], sizes = [8, 128], strides = [1, 1]} : vector<8x512xf32> to vector<8x128xf32>
    %cst_118 = arith.constant 5.000000e-01 : f32
    %282 = vector.broadcast %cst_118 : f32 to vector<8x128xf32>
    %283 = arith.mulf %282, %278 : vector<8x128xf32>
    %284 = math.tanh %283 : vector<8x128xf32>
    %cst_119 = arith.constant 5.000000e-01 : f32
    %285 = vector.broadcast %cst_119 : f32 to vector<8x128xf32>
    %286 = arith.mulf %285, %284 : vector<8x128xf32>
    %cst_120 = arith.constant 5.000000e-01 : f32
    %287 = vector.broadcast %cst_120 : f32 to vector<8x128xf32>
    %288 = arith.addf %286, %287 : vector<8x128xf32>
    %cst_121 = arith.constant 5.000000e-01 : f32
    %289 = vector.broadcast %cst_121 : f32 to vector<8x128xf32>
    %290 = arith.mulf %289, %279 : vector<8x128xf32>
    %291 = math.tanh %290 : vector<8x128xf32>
    %cst_122 = arith.constant 5.000000e-01 : f32
    %292 = vector.broadcast %cst_122 : f32 to vector<8x128xf32>
    %293 = arith.mulf %292, %291 : vector<8x128xf32>
    %cst_123 = arith.constant 5.000000e-01 : f32
    %294 = vector.broadcast %cst_123 : f32 to vector<8x128xf32>
    %295 = arith.addf %293, %294 : vector<8x128xf32>
    %cst_124 = arith.constant 5.000000e-01 : f32
    %296 = vector.broadcast %cst_124 : f32 to vector<8x128xf32>
    %297 = arith.mulf %296, %281 : vector<8x128xf32>
    %298 = math.tanh %297 : vector<8x128xf32>
    %cst_125 = arith.constant 5.000000e-01 : f32
    %299 = vector.broadcast %cst_125 : f32 to vector<8x128xf32>
    %300 = arith.mulf %299, %298 : vector<8x128xf32>
    %cst_126 = arith.constant 5.000000e-01 : f32
    %301 = vector.broadcast %cst_126 : f32 to vector<8x128xf32>
    %302 = arith.addf %300, %301 : vector<8x128xf32>
    %303 = math.tanh %280 : vector<8x128xf32>
    %304 = arith.mulf %295, %262 : vector<8x128xf32>
    %305 = arith.mulf %288, %303 : vector<8x128xf32>
    %306 = arith.addf %304, %305 : vector<8x128xf32>
    %307 = math.tanh %306 : vector<8x128xf32>
    %308 = arith.mulf %302, %307 : vector<8x128xf32>
    %c6_127 = arith.constant 6 : index
    %c0_128 = arith.constant 0 : index
    %c0_129 = arith.constant 0 : index
    %309 = vector.load %arg5[%c6_127, %c0_128, %c0_129] : memref<8x8x128xf32, #tpu.memory_space<vmem>>, vector<1x8x128xf32>
    %310 = vector.shape_cast %309 : vector<1x8x128xf32> to vector<8x128xf32>
    %311 = vector.shape_cast %308 : vector<8x128xf32> to vector<1x8x128xf32>
    tpu.vector_store %arg5[%c6_127, %c0_128, %c0_129], %311 {strides = array<i32>} : memref<8x8x128xf32, #tpu.memory_space<vmem>>, vector<1x8x128xf32>,
    %c8_i32_130 = arith.constant 8 : i32
    %312 = arith.muli %arg1, %c8_i32_130 : i32
    %c6_i32 = arith.constant 6 : i32
    %313 = arith.addi %312, %c6_i32 : i32
    %c7_i32_131 = arith.constant 7 : i32
    %314 = arith.cmpi eq, %313, %c7_i32_131 : i32
    %315 = arith.extui %314 : i1 to i32
    %c0_i32_132 = arith.constant 0 : i32
    %316 = arith.cmpi ne, %315, %c0_i32_132 : i32
    scf.if %316 {
      %c0_156 = arith.constant 0 : index
      %c0_157 = arith.constant 0 : index
      %363 = vector.load %arg6[%c0_156, %c0_157] : memref<8x128xf32, #tpu.memory_space<vmem>>, vector<8x128xf32>
      tpu.vector_store %arg6[%c0_156, %c0_157], %306 {strides = array<i32>} : memref<8x128xf32, #tpu.memory_space<vmem>>, vector<8x128xf32>,
    } else {
    }
    %c7 = arith.constant 7 : index
    %c0_133 = arith.constant 0 : index
    %c0_134 = arith.constant 0 : index
    %317 = vector.load %arg2[%c7, %c0_133, %c0_134] : memref<8x8x512xf32, #tpu.memory_space<vmem>>, vector<1x8x512xf32>
    %318 = vector.shape_cast %317 : vector<1x8x512xf32> to vector<8x512xf32>
    %319 = arith.addf %318, %6 : vector<8x512xf32>
    %cst_135 = arith.constant dense<0.000000e+00> : vector<8x512xf32>
    %320 = tpu.matmul %308, %3, %cst_135 {dimension_numbers = #tpu.dot_dimension_numbers<[1], [0], [0], [1], [0, 0, 1, 1], [], []>} : vector<8x128xf32>, vector<128x512xf32>, vector<8x512xf32> -> vector<8x512xf32>
    %321 = arith.addf %319, %320 : vector<8x512xf32>
    %322 = vector.extract_strided_slice %321 {offsets = [0, 0], sizes = [8, 128], strides = [1, 1]} : vector<8x512xf32> to vector<8x128xf32>
    %323 = vector.extract_strided_slice %321 {offsets = [0, 128], sizes = [8, 128], strides = [1, 1]} : vector<8x512xf32> to vector<8x128xf32>
    %324 = vector.extract_strided_slice %321 {offsets = [0, 256], sizes = [8, 128], strides = [1, 1]} : vector<8x512xf32> to vector<8x128xf32>
    %325 = vector.extract_strided_slice %321 {offsets = [0, 384], sizes = [8, 128], strides = [1, 1]} : vector<8x512xf32> to vector<8x128xf32>
    %cst_136 = arith.constant 5.000000e-01 : f32
    %326 = vector.broadcast %cst_136 : f32 to vector<8x128xf32>
    %327 = arith.mulf %326, %322 : vector<8x128xf32>
    %328 = math.tanh %327 : vector<8x128xf32>
    %cst_137 = arith.constant 5.000000e-01 : f32
    %329 = vector.broadcast %cst_137 : f32 to vector<8x128xf32>
    %330 = arith.mulf %329, %328 : vector<8x128xf32>
    %cst_138 = arith.constant 5.000000e-01 : f32
    %331 = vector.broadcast %cst_138 : f32 to vector<8x128xf32>
    %332 = arith.addf %330, %331 : vector<8x128xf32>
    %cst_139 = arith.constant 5.000000e-01 : f32
    %333 = vector.broadcast %cst_139 : f32 to vector<8x128xf32>
    %334 = arith.mulf %333, %323 : vector<8x128xf32>
    %335 = math.tanh %334 : vector<8x128xf32>
    %cst_140 = arith.constant 5.000000e-01 : f32
    %336 = vector.broadcast %cst_140 : f32 to vector<8x128xf32>
    %337 = arith.mulf %336, %335 : vector<8x128xf32>
    %cst_141 = arith.constant 5.000000e-01 : f32
    %338 = vector.broadcast %cst_141 : f32 to vector<8x128xf32>
    %339 = arith.addf %337, %338 : vector<8x128xf32>
    %cst_142 = arith.constant 5.000000e-01 : f32
    %340 = vector.broadcast %cst_142 : f32 to vector<8x128xf32>
    %341 = arith.mulf %340, %325 : vector<8x128xf32>
    %342 = math.tanh %341 : vector<8x128xf32>
    %cst_143 = arith.constant 5.000000e-01 : f32
    %343 = vector.broadcast %cst_143 : f32 to vector<8x128xf32>
    %344 = arith.mulf %343, %342 : vector<8x128xf32>
    %cst_144 = arith.constant 5.000000e-01 : f32
    %345 = vector.broadcast %cst_144 : f32 to vector<8x128xf32>
    %346 = arith.addf %344, %345 : vector<8x128xf32>
    %347 = math.tanh %324 : vector<8x128xf32>
    %348 = arith.mulf %339, %306 : vector<8x128xf32>
    %349 = arith.mulf %332, %347 : vector<8x128xf32>
    %350 = arith.addf %348, %349 : vector<8x128xf32>
    %351 = math.tanh %350 : vector<8x128xf32>
    %352 = arith.mulf %346, %351 : vector<8x128xf32>
    %c7_145 = arith.constant 7 : index
    %c0_146 = arith.constant 0 : index
    %c0_147 = arith.constant 0 : index
    %353 = vector.load %arg5[%c7_145, %c0_146, %c0_147] : memref<8x8x128xf32, #tpu.memory_space<vmem>>, vector<1x8x128xf32>
    %354 = vector.shape_cast %353 : vector<1x8x128xf32> to vector<8x128xf32>
    %355 = vector.shape_cast %352 : vector<8x128xf32> to vector<1x8x128xf32>
    tpu.vector_store %arg5[%c7_145, %c0_146, %c0_147], %355 {strides = array<i32>} : memref<8x8x128xf32, #tpu.memory_space<vmem>>, vector<1x8x128xf32>,
    %c8_i32_148 = arith.constant 8 : i32
    %356 = arith.muli %arg1, %c8_i32_148 : i32
    %c7_i32_149 = arith.constant 7 : i32
    %357 = arith.addi %356, %c7_i32_149 : i32
    %c7_i32_150 = arith.constant 7 : i32
    %358 = arith.cmpi eq, %357, %c7_i32_150 : i32
    %359 = arith.extui %358 : i1 to i32
    %c0_i32_151 = arith.constant 0 : i32
    %360 = arith.cmpi ne, %359, %c0_i32_151 : i32
    scf.if %360 {
      %c0_156 = arith.constant 0 : index
      %c0_157 = arith.constant 0 : index
      %363 = vector.load %arg6[%c0_156, %c0_157] : memref<8x128xf32, #tpu.memory_space<vmem>>, vector<8x128xf32>
      tpu.vector_store %arg6[%c0_156, %c0_157], %350 {strides = array<i32>} : memref<8x128xf32, #tpu.memory_space<vmem>>, vector<8x128xf32>,
    } else {
    }
    %c0_152 = arith.constant 0 : index
    %c0_153 = arith.constant 0 : index
    %361 = vector.load %arg7[%c0_152, %c0_153] : memref<8x128xf32, #tpu.memory_space<vmem>>, vector<8x128xf32>
    tpu.vector_store %arg7[%c0_152, %c0_153], %352 {strides = array<i32>} : memref<8x128xf32, #tpu.memory_space<vmem>>, vector<8x128xf32>,
    %c0_154 = arith.constant 0 : index
    %c0_155 = arith.constant 0 : index
    %362 = vector.load %arg8[%c0_154, %c0_155] : memref<8x128xf32, #tpu.memory_space<vmem>>, vector<8x128xf32>
    tpu.vector_store %arg8[%c0_154, %c0_155], %350 {strides = array<i32>} : memref<8x128xf32, #tpu.memory_space<vmem>>, vector<8x128xf32>,
    return
  }
  func.func @transform_0(%arg0: i32, %arg1: i32) -> (i32, i32, i32) {
    %c0_i32 = arith.constant 0 : i32
    %c0_i32_0 = arith.constant 0 : i32
    return %arg1, %arg0, %c0_i32 : i32, i32, i32
  }
  func.func @transform_1(%arg0: i32, %arg1: i32) -> (i32, i32) {
    %c0_i32 = arith.constant 0 : i32
    %c0_i32_0 = arith.constant 0 : i32
    %c0_i32_1 = arith.constant 0 : i32
    return %c0_i32, %c0_i32_0 : i32, i32
  }
  func.func @transform_2(%arg0: i32, %arg1: i32) -> (i32, i32) {
    %c0_i32 = arith.constant 0 : i32
    %c0_i32_0 = arith.constant 0 : i32
    %c0_i32_1 = arith.constant 0 : i32
    return %c0_i32, %c0_i32_0 : i32, i32
  }
  func.func @transform_3(%arg0: i32, %arg1: i32) -> (i32, i32, i32) {
    %c0_i32 = arith.constant 0 : i32
    %c0_i32_0 = arith.constant 0 : i32
    return %arg1, %arg0, %c0_i32 : i32, i32, i32
  }
  func.func @transform_4(%arg0: i32, %arg1: i32) -> (i32, i32) {
    %c0_i32 = arith.constant 0 : i32
    %c0_i32_0 = arith.constant 0 : i32
    return %arg0, %c0_i32 : i32, i32
  }
}

</mosaic_0001>

<bundles_post_ra>
// kernel: tpu_custom_call.1
= control target key start
LH: loop header
LB: loop body
LE: loop exit
PB: predicated region body
PF: predicated region fallthrough
CT: control target
= control target key end

     0   :  { %10 = vsyncpa [#allocation5], 0  ;;  %s2804_s0 = inlined_call_operand.hbm [shape: f32[8,8,512], index: 0, kind: input, shape index: {}]   ;;  %s2805_s1 = inlined_call_operand.hbm [shape: f32[128,512], index: 1, kind: input, shape index: {}]   ;;  %s2806_s2 = inlined_call_operand.vmem [shape: f32[1,512], index: 2, kind: input, shape index: {}]   ;;  %s2807_s3 = inlined_call_operand.hbm [shape: f32[8,8,128], index: 3, kind: output, shape index: {0}]   ;;  %s2808_s4 = inlined_call_operand.hbm [shape: f32[8,128], index: 4, kind: output, shape index: {1}]  }
   0x1   :  { %11 = vsyncpa [#allocation8], 0 }
   0x2   :  { %12 = vsyncpa [#allocation6], 0 }
   0x3   :  { %13 = vsyncpa [#allocation11], 0  ;;  %s2317_s15 = smov [#allocation4]   ;;  %s2221_s19 = scalar_lea.hbm %s2804_s0, 4096 }
   0x4   :  { %s19_s16 = sshll.u32 %s2317_s15, 4  ;;  %p2222_p0 = scmp.ne.s32.totalorder %s2804_s0, %s2221_s19  ;;  %s20_s16 = int_to_ptr.vmem [resolvable:$true] %s19_s16 }
   0x5   :  { %p2225_p1 = scmp.lt.u32.totalorder %s2221_s19, %s2804_s0 }
   0x7   :  { %p2227_p2 = pnand %p2225_p1, %p2222_p0 }
   0x9   :  { %2230 = shalt.err (!%p2227_p2)
}
   0xa   :  { %s2231_s24 = scalar_lea.vmem %s20_s16, 4096  ;;  %p2236_p4 = scmp.lt.s32.totalorder %s20_s16, %s20_s16 }
   0xb   :  { %p2232_p3 = scmp.ne.s32.totalorder %s20_s16, %s2231_s24  ;;  %p2237_p5 = scmp.lt.s32.totalorder %s2231_s24, %s2231_s24 }
   0xd   :  { %p2238_p6 = por %p2237_p5, %p2236_p4 }
   0xf   :  { %p2239_p7 = pnand %p2238_p6, %p2232_p3 }
  0x11   :  { %2242 = shalt.err (!%p2239_p7)
}
  0x12   :  { %s2318_s25 = smov 512   ;;  %s2319_s26 = smov 32  }
  0x13   :  { %25 = dma.hbm_to_vmem [thread:$0]  %s2804_s0, 4096, %s20_s16, [#allocation5], %s2318_s25, %s2318_s25, %s2319_s26  }
  0x14   :  { %s2320_s29 = smov [#allocation7]   ;;  %s2243_s7 = scalar_lea.hbm %s2805_s1, 8192 }
  0x15   :  { %s31_s30 = sshll.u32 %s2320_s29, 4  ;;  %p2244_p8 = scmp.ne.s32.totalorder %s2805_s1, %s2243_s7  ;;  %s32_s30 = int_to_ptr.vmem [resolvable:$true] %s31_s30 }
  0x16   :  { %p2247_p9 = scmp.lt.u32.totalorder %s2243_s7, %s2805_s1 }
  0x18   :  { %p2249_p10 = pnand %p2247_p9, %p2244_p8 }
  0x1a   :  { %2252 = shalt.err (!%p2249_p10)
}
  0x1b   :  { %s2253_s12 = scalar_lea.vmem %s32_s30, 8192  ;;  %p2258_p12 = scmp.lt.s32.totalorder %s32_s30, %s32_s30 }
  0x1c   :  { %p2254_p11 = scmp.ne.s32.totalorder %s32_s30, %s2253_s12  ;;  %p2259_p13 = scmp.lt.s32.totalorder %s2253_s12, %s2253_s12 }
  0x1e   :  { %p2260_p0 = por %p2259_p13, %p2258_p12 }
  0x20   :  { %p2261_p1 = pnand %p2260_p0, %p2254_p11 }
  0x22   :  { %2264 = shalt.err (!%p2261_p1)
}
  0x23   :  { %37 = dma.hbm_to_vmem [thread:$0]  %s2805_s1, 8192, %s32_s30, [#allocation8], %s2318_s25, %s2318_s25, %s2319_s26  }
  0x24   :  { %2309 = dma.done.wait [#allocation5], 4096  }
  0x25   :  { %2310 = vsyncadd [#allocation5], 4294963200 }
  0x26   :  { %2311 = dma.done.wait [#allocation8], 8192  }
  0x27   :  { %2312 = vsyncadd [#allocation8], 4294959104  ;;  %v2321_v0 = vmov 0.0   ;;  %v53_v1 = vld [vmem:[#allocation7 + $0x8] sm:$0xff]  ;;  %v52_v3 = vld [vmem:[#allocation7] sm:$0xff] }
  0x28   :  { %212 = vmatprep.mubr.f32.mxu0 %v2321_v0  ;;  %283 = vmatprep.mubr.f32.mxu1 %v2321_v0  ;;  %v57_v2 = vld [vmem:[#allocation7 + $0x28] sm:$0xff]  ;;  %v56_v5 = vld [vmem:[#allocation7 + $0x20] sm:$0xff]  ;;  %v55_v12 = vld [vmem:[#allocation7 + $0x18] sm:$0xff] }
  0x29   :  { %v2377_v4 = vpack.c.bf16 %v57_v2, %v53_v1  ;;  %v61_v6 = vld [vmem:[#allocation7 + $0x48] sm:$0xff]  ;;  %v2379_v8 = vpack.c.bf16 %v56_v5, %v52_v3  ;;  %v60_v10 = vld [vmem:[#allocation7 + $0x40] sm:$0xff]  ;;  %v59_v13 = vld [vmem:[#allocation7 + $0x38] sm:$0xff] }
  0x2a   :  { %v65_v7 = vld [vmem:[#allocation7 + $0x68] sm:$0xff]  ;;  %v64_v11 = vld [vmem:[#allocation7 + $0x60] sm:$0xff]  ;;  %v54_v14 = vld [vmem:[#allocation7 + $0x10] sm:$0xff]  ;;  %v2387_v17 = vpack.c.bf16 %v59_v13, %v55_v12 }
  0x2b   :  { %v2381_v9 = vpack.c.bf16 %v65_v7, %v61_v6  ;;  %1621 = vmatprep.subr.bf16.mxu0 %v2377_v4  ;;  %v58_v15 = vld [vmem:[#allocation7 + $0x30] sm:$0xff]  ;;  %v2385_v16 = vpack.c.bf16 %v64_v11, %v60_v10  ;;  %v69_v19 = vld [vmem:[#allocation7 + $0x88] sm:$0xff]  ;;  %v68_v21 = vld [vmem:[#allocation7 + $0x80] sm:$0xff] }
  0x2c   :  { %1623 = vmatpush1.bf16.msra.mxu0 %v2379_v8  ;;  %v2389_v18 = vpack.c.bf16 %v58_v15, %v54_v14  ;;  %v73_v20 = vld [vmem:[#allocation7 + $0xa8] sm:$0xff]  ;;  %v72_v23 = vld [vmem:[#allocation7 + $0xa0] sm:$0xff]  ;;  %v63_v24 = vld [vmem:[#allocation7 + $0x58] sm:$0xff]  ;;  %1653 = vmatprep.subr.bf16.mxu1 %v2387_v17 }
  0x2d   :  { %1625 = vmatprep.subr.bf16.mxu0 %v2381_v9  ;;  %v2392_v22 = vpack.c.bf16 %v73_v20, %v69_v19  ;;  %v67_v25 = vld [vmem:[#allocation7 + $0x78] sm:$0xff]  ;;  %v62_v27 = vld [vmem:[#allocation7 + $0x50] sm:$0xff]  ;;  %v77_v29 = vld [vmem:[#allocation7 + $0xc8] sm:$0xff]  ;;  %v2401_v32 = vpack.c.bf16 %v72_v23, %v68_v21 }
  0x2e   :  { %v2395_v26 = vpack.c.bf16 %v67_v25, %v63_v24  ;;  %v66_v28 = vld [vmem:[#allocation7 + $0x70] sm:$0xff]  ;;  %1655 = vmatpush1.bf16.msra.mxu1 %v2389_v18  ;;  %v81_v31 = vld [vmem:[#allocation7 + $0xe8] sm:$0xff]  ;;  %v71_v33 = vld [vmem:[#allocation7 + $0x98] sm:$0xff] }
  0x2f   :  { %v2398_v30 = vpack.c.bf16 %v66_v28, %v62_v27  ;;  %v75_v34 = vld [vmem:[#allocation7 + $0xb8] sm:$0xff]  ;;  %v70_v35 = vld [vmem:[#allocation7 + $0x90] sm:$0xff]  ;;  %v2405_v36 = vpack.c.bf16 %v81_v31, %v77_v29  ;;  %v76_v37 = vld [vmem:[#allocation7 + $0xc0] sm:$0xff] }
  0x30   :  { %1627 = vmatpush1.bf16.msra.mxu0 %v2385_v16  ;;  %1657 = vmatprep.subr.bf16.mxu1 %v2395_v26  ;;  %v80_v38 = vld [vmem:[#allocation7 + $0xe0] sm:$0xff]  ;;  %v2407_v39 = vpack.c.bf16 %v75_v34, %v71_v33  ;;  %v74_v40 = vld [vmem:[#allocation7 + $0xb0] sm:$0xff]  ;;  %v85_v41 = vld [vmem:[#allocation7 + $0x108] sm:$0xff] }
  0x31   :  { %1629 = vmatprep.subr.bf16.mxu0 %v2392_v22  ;;  %v89_v42 = vld [vmem:[#allocation7 + $0x128] sm:$0xff]  ;;  %v79_v43 = vld [vmem:[#allocation7 + $0xd8] sm:$0xff]  ;;  %v2410_v44 = vpack.c.bf16 %v74_v40, %v70_v35  ;;  %v2413_v46 = vpack.c.bf16 %v80_v38, %v76_v37  ;;  %v84_v47 = vld [vmem:[#allocation7 + $0x100] sm:$0xff] }
  0x32   :  { %1659 = vmatpush1.bf16.msra.mxu1 %v2398_v30  ;;  %v83_v45 = vld [vmem:[#allocation7 + $0xf8] sm:$0xff]  ;;  %v78_v49 = vld [vmem:[#allocation7 + $0xd0] sm:$0xff]  ;;  %v2419_v51 = vpack.c.bf16 %v89_v42, %v85_v41  ;;  %v88_v52 = vld [vmem:[#allocation7 + $0x120] sm:$0xff] }
  0x33   :  { %1661 = vmatprep.subr.bf16.mxu1 %v2407_v39  ;;  %v2416_v48 = vpack.c.bf16 %v83_v45, %v79_v43  ;;  %v82_v50 = vld [vmem:[#allocation7 + $0xf0] sm:$0xff]  ;;  %v87_v53 = vld [vmem:[#allocation7 + $0x118] sm:$0xff]  ;;  %v93_v55 = vld [vmem:[#allocation7 + $0x148] sm:$0xff]  ;;  %v2425_v58 = vpack.c.bf16 %v88_v52, %v84_v47 }
  0x34   :  { %1631 = vmatpush1.bf16.msra.mxu0 %v2401_v32  ;;  %v91_v54 = vld [vmem:[#allocation7 + $0x138] sm:$0xff]  ;;  %v97_v56 = vld [vmem:[#allocation7 + $0x168] sm:$0xff]  ;;  %v2422_v57 = vpack.c.bf16 %v82_v50, %v78_v49  ;;  %v92_v59 = vld [vmem:[#allocation7 + $0x140] sm:$0xff]  ;;  %v118_v49 = vlaneseq }
  0x35   :  { %1633 = vmatprep.subr.bf16.mxu0 %v2405_v36  ;;  %v2428_v60 = vpack.c.bf16 %v91_v54, %v87_v53  ;;  %v86_v61 = vld [vmem:[#allocation7 + $0x110] sm:$0xff]  ;;  %v2431_v63 = vpack.c.bf16 %v97_v56, %v93_v55  ;;  %v96_v1 = vld [vmem:[#allocation7 + $0x160] sm:$0xff]  ;;  %v95_v2 = vld [vmem:[#allocation7 + $0x158] sm:$0xff] }
  0x36   :  { %1663 = vmatpush1.bf16.msra.mxu1 %v2410_v44  ;;  %v90_v62 = vld [vmem:[#allocation7 + $0x130] sm:$0xff]  ;;  %v99_v3 = vld [vmem:[#allocation7 + $0x178] sm:$0xff]  ;;  %v101_v5 = vld [vmem:[#allocation7 + $0x188] sm:$0xff]  ;;  %v2437_v10 = vpack.c.bf16 %v96_v1, %v92_v59  ;;  %v119_v50 = vshrl.u32 %v118_v49, 7 }
  0x37   :  { %1665 = vmatprep.subr.bf16.mxu1 %v2416_v48  ;;  %v105_v6 = vld [vmem:[#allocation7 + $0x1a8] sm:$0xff]  ;;  %v2434_v7 = vpack.c.bf16 %v90_v62, %v86_v61  ;;  %v100_v11 = vld [vmem:[#allocation7 + $0x180] sm:$0xff]  ;;  %v2440_v12 = vpack.c.bf16 %v99_v3, %v95_v2  ;;  %v94_v13 = vld [vmem:[#allocation7 + $0x150] sm:$0xff] }
  0x38   :  { %1635 = vmatpush1.bf16.msra.mxu0 %v2413_v46  ;;  %v98_v14 = vld [vmem:[#allocation7 + $0x170] sm:$0xff]  ;;  %v2443_v15 = vpack.c.bf16 %v105_v6, %v101_v5  ;;  %v104_v19 = vld [vmem:[#allocation7 + $0x1a0] sm:$0xff]  ;;  %v103_v20 = vld [vmem:[#allocation7 + $0x198] sm:$0xff]  ;;  %v120_v52 = vsub.s32 0, %v119_v50  ;;  %v124_v54 = vsub.s32 1, %v119_v50  ;;  %v128_v55 = vsub.s32 2, %v119_v50 }
  0x39   :  { %1637 = vmatprep.subr.bf16.mxu0 %v2419_v51  ;;  %v107_v21 = vld [vmem:[#allocation7 + $0x1b8] sm:$0xff]  ;;  %v109_v23 = vld [vmem:[#allocation7 + $0x1c8] sm:$0xff]  ;;  %v2446_v25 = vpack.c.bf16 %v98_v14, %v94_v13  ;;  %v2449_v27 = vpack.c.bf16 %v104_v19, %v100_v11  ;;  %v108_v28 = vld [vmem:[#allocation7 + $0x1c0] sm:$0xff]  ;;  %v132_v5 = vsub.s32 3, %v119_v50 }
  0x3a   :  { %1667 = vmatpush1.bf16.msra.mxu1 %v2422_v57  ;;  %v113_v24 = vld [vmem:[#allocation7 + $0x1e8] sm:$0xff]  ;;  %v2452_v29 = vpack.c.bf16 %v107_v21, %v103_v20  ;;  %v102_v31 = vld [vmem:[#allocation7 + $0x190] sm:$0xff]  ;;  %v112_v35 = vld [vmem:[#allocation7 + $0x1e0] sm:$0xff] }
  0x3b   :  { %1669 = vmatprep.subr.bf16.mxu1 %v2428_v60  ;;  %v106_v33 = vld [vmem:[#allocation7 + $0x1b0] sm:$0xff]  ;;  %v2455_v34 = vpack.c.bf16 %v113_v24, %v109_v23  ;;  %v111_v37 = vld [vmem:[#allocation7 + $0x1d8] sm:$0xff]  ;;  %v2461_v41 = vpack.c.bf16 %v112_v35, %v108_v28  ;;  %v116_v53 = vld [vmem:[%s2806_s2] sm:$0xf]  ;;  %s2322_s2 = smov [#allocation10]  }
  0x3c   :  { %1639 = vmatpush1.bf16.msra.mxu0 %v2425_v58  ;;  %v115_v38 = vld [vmem:[#allocation7 + $0x1f8] sm:$0xff]  ;;  %v2458_v40 = vpack.c.bf16 %v106_v33, %v102_v31  ;;  %v110_v43 = vld [vmem:[#allocation7 + $0x1d0] sm:$0xff]  ;;  %v2514_v56 = vrot.slane %v116_v53, %v120_v52  ;;  %v140_v59 = vld [vmem:[#allocation4] sm:$0xff]  ;;  %v2516_v61 = vrot.slane %v116_v53, %v124_v54  ;;  %v2518_v1 = vrot.slane %v116_v53, %v128_v55  ;;  %s1606_s15 = sshll.u32 %s2322_s2, 4  ;;  %s1607_s15 = int_to_ptr.vmem [resolvable:$true] %s1606_s15 }
  0x3d   :  { %1641 = vmatprep.subr.bf16.mxu0 %v2431_v63  ;;  %v2464_v42 = vpack.c.bf16 %v115_v38, %v111_v37  ;;  %v114_v45 = vld [vmem:[#allocation7 + $0x1f0] sm:$0xff]  ;;  %v141_v62 = vld [vmem:[#allocation4 + $0x8] sm:$0xff]  ;;  %v2523_v20 = vrot.slane %v116_v53, %v132_v5  ;;  %v143_v23 = vld [vmem:[#allocation4 + $0x18] sm:$0xff]  ;;  %s2265_s16 = scalar_lea.vmem %s1607_s15, 128  ;;  %p2270_p3 = scmp.lt.s32.totalorder %s1607_s15, %s1607_s15 }
  0x3e   :  { %1671 = vmatpush1.bf16.msra.mxu1 %v2434_v7  ;;  %v2468_v47 = vpack.c.bf16 %v114_v45, %v110_v43  ;;  %v144_v2 = vadd.f32 %v140_v59, %v2514_v56  ;;  %v142_v3 = vld [vmem:[#allocation4 + $0x10] sm:$0xff]  ;;  %v145_v6 = vadd.f32 %v141_v62, %v2516_v61  ;;  %p2266_p2 = scmp.ne.s32.totalorder %s1607_s15, %s2265_s16  ;;  %p2271_p4 = scmp.lt.s32.totalorder %s2265_s16, %s2265_s16 }
  0x3f   :  { %1673 = vmatprep.subr.bf16.mxu1 %v2440_v12  ;;  %v146_v13 = vadd.f32 %v142_v3, %v2518_v1  ;;  %v147_v37 = vadd.f32 %v143_v23, %v2523_v20  ;;  %v322_v23 = vld [vmem:[#allocation4 + $0x30] sm:$0xff] }
  0x40   :  { %1643 = vmatpush1.bf16.msra.mxu0 %v2437_v10  ;;  %p2272_p5 = por %p2271_p4, %p2270_p3 }
  0x41   :  { %1645 = vmatprep.subr.bf16.mxu0 %v2443_v15 }
  0x42   :  { %1675 = vmatpush1.bf16.msra.mxu1 %v2446_v25  ;;  %p2273_p6 = pnand %p2272_p5, %p2266_p2 }
  0x43   :  { %1677 = vmatprep.subr.bf16.mxu1 %v2452_v29 }
  0x44   :  { %1647 = vmatpush1.bf16.msra.mxu0 %v2449_v27 }
  0x45   :  { %1649 = vmatprep.subr.bf16.mxu0 %v2455_v34 }
  0x46   :  { %1679 = vmatpush1.bf16.msra.mxu1 %v2458_v40 }
  0x47   :  { %1681 = vmatprep.subr.bf16.mxu1 %v2464_v42 }
  0x48   :  { %1651 = vmatpush1.bf16.msra.mxu0 %v2461_v41 }
  0x49   :  { %1685 = vmatprep.subr.bf16.mxu0 %v2377_v4 }
  0x4a   :  { %1683 = vmatpush1.bf16.msra.mxu1 %v2468_v47 }
  0x4b   :  { %213 = vmatmul.mubr.f32.vlgmr.msra.gmra.mrb[0].mxu0 %v2321_v0  ;;  %1717 = vmatprep.subr.bf16.mxu1 %v2387_v17 }
  0x4c   :  { %1687 = vmatpush1.bf16.msra.mxu0 %v2379_v8  ;;  %392 = vmatprep.mubr.f32.mxu0 %v2321_v0 }
  0x4d   :  { %1689 = vmatprep.subr.bf16.mxu0 %v2381_v9  ;;  %284 = vmatmul.mubr.f32.vlgmr.msra.gmra.mrb[0].mxu1 %v2321_v0 }
  0x4e   :  { %1719 = vmatpush1.bf16.msra.mxu1 %v2389_v18  ;;  %463 = vmatprep.mubr.f32.mxu1 %v2321_v0 }
  0x4f   :  { %1721 = vmatprep.subr.bf16.mxu1 %v2395_v26 }
  0x50   :  { %1691 = vmatpush1.bf16.msra.mxu0 %v2385_v16 }
  0x51   :  { %1693 = vmatprep.subr.bf16.mxu0 %v2392_v22 }
  0x52   :  { %1723 = vmatpush1.bf16.msra.mxu1 %v2398_v30 }
  0x53   :  { %1725 = vmatprep.subr.bf16.mxu1 %v2407_v39 }
  0x54   :  { %1695 = vmatpush1.bf16.msra.mxu0 %v2401_v32 }
  0x55   :  { %1697 = vmatprep.subr.bf16.mxu0 %v2405_v36 }
  0x56   :  { %1727 = vmatpush1.bf16.msra.mxu1 %v2410_v44 }
  0x57   :  { %1729 = vmatprep.subr.bf16.mxu1 %v2416_v48 }
  0x58   :  { %1699 = vmatpush1.bf16.msra.mxu0 %v2413_v46 }
  0x59   :  { %1701 = vmatprep.subr.bf16.mxu0 %v2419_v51 }
  0x5a   :  { %1731 = vmatpush1.bf16.msra.mxu1 %v2422_v57 }
  0x5b   :  { %1733 = vmatprep.subr.bf16.mxu1 %v2428_v60 }
  0x5c   :  { %1703 = vmatpush1.bf16.msra.mxu0 %v2425_v58 }
  0x5d   :  { %1705 = vmatprep.subr.bf16.mxu0 %v2431_v63 }
  0x5e   :  { %1735 = vmatpush1.bf16.msra.mxu1 %v2434_v7 }
  0x5f   :  { %1737 = vmatprep.subr.bf16.mxu1 %v2440_v12 }
  0x60   :  { %1707 = vmatpush1.bf16.msra.mxu0 %v2437_v10 }
  0x61   :  { %1709 = vmatprep.subr.bf16.mxu0 %v2443_v15 }
  0x62   :  { %1739 = vmatpush1.bf16.msra.mxu1 %v2446_v25 }
  0x63   :  { %1741 = vmatprep.subr.bf16.mxu1 %v2452_v29 }
  0x64   :  { %1711 = vmatpush1.bf16.msra.mxu0 %v2449_v27 }
  0x65   :  { %1713 = vmatprep.subr.bf16.mxu0 %v2455_v34 }
  0x66   :  { %1743 = vmatpush1.bf16.msra.mxu1 %v2458_v40 }
  0x67   :  { %1745 = vmatprep.subr.bf16.mxu1 %v2464_v42 }
  0x68   :  { %1715 = vmatpush1.bf16.msra.mxu0 %v2461_v41 }
  0x69   :  { %1749 = vmatprep.subr.bf16.mxu0 %v2377_v4 }
  0x6a   :  { %1747 = vmatpush1.bf16.msra.mxu1 %v2468_v47 }
  0x6b   :  { %1781 = vmatprep.subr.bf16.mxu1 %v2387_v17 }
 0x11e   :  { %v214_v11 = vpop.f32.mrb[0].mxu0 }
 0x11f   :  { %v290_v14 = vadd.f32 %v214_v11, %v144_v2  ;;  %v216_v19 = vpop.f32.mrb[1].mxu0 }
 0x120   :  { %v291_v21 = vadd.f32 %v216_v19, %v145_v6  ;;  %v285_v28 = vpop.f32.mrb[0].mxu1  ;;  %v321_v19 = vld [vmem:[#allocation4 + $0x28] sm:$0xff] }
 0x121   :  { %v294_v24 = vmul.f32 0.5, %v290_v14  ;;  %v292_v33 = vadd.f32 %v285_v28, %v146_v13  ;;  %v287_v35 = vpop.f32.mrb[1].mxu1  ;;  %v320_v14 = vld [vmem:[#allocation4 + $0x20] sm:$0xff] }
 0x122   :  { %v298_v31 = vmul.f32 0.5, %v291_v21  ;;  %v293_v38 = vadd.f32 %v287_v35, %v147_v37  ;;  %v324_v21 = vadd.f32 %v320_v14, %v2514_v56  ;;  %v326_v35 = vadd.f32 %v322_v23, %v2518_v1 }
 0x123   :  { %2141 = vtanh.f32 %v294_v24  ;;  %v325_v24 = vadd.f32 %v321_v19, %v2516_v61 }
 0x124   :  { %2143 = vtanh.f32 %v298_v31  ;;  %v302_v43 = vmul.f32 0.5, %v293_v38 }
 0x125   :  { %2145 = vtanh.f32 %v292_v33 }
 0x126   :  { %2147 = vtanh.f32 %v302_v43 }
 0x12d   :  { %v2142_v45 = vpop.eup %2141 }
 0x12e   :  { %v2144_v49 = vpop.eup %2143  ;;  %v296_v50 = vmul.f32 0.5, %v2142_v45  ;;  %v323_v45 = vld [vmem:[#allocation4 + $0x38] sm:$0xff] }
 0x12f   :  { %v2146_v52 = vpop.eup %2145  ;;  %v300_v53 = vmul.f32 0.5, %v2144_v49 }
 0x130   :  { %v297_v54 = vadd.f32 0.5, %v296_v50  ;;  %v2148_v3 = vpop.eup %2147 }
 0x131   :  { %v301_v55 = vadd.f32 0.5, %v300_v53  ;;  %v304_v5 = vmul.f32 0.5, %v2148_v3  ;;  %v327_v53 = vadd.f32 %v323_v45, %v2523_v20 }
 0x132   :  { %v308_v59 = vmul.f32 %v2146_v52, %v297_v54 }
 0x133   :  { %v307_v62 = vmul.f32 0.0, %v301_v55  ;;  %v305_v6 = vadd.f32 0.5, %v304_v5 }
 0x135   :  { %v2526_v2 = vadd.f32 %v308_v59, %v307_v62 }
 0x137   :  { %2149 = vtanh.f32 %v2526_v2 }
 0x141   :  { %v2150_v11 = vpop.eup %2149 }
 0x142   :  { %v311_v13 = vmul.f32 %v2150_v11, %v305_v6 }
 0x144   :  { %312 = vst [vmem:[#allocation9] sm:$0xff] %v311_v13  ;;  %393 = vmatmul.mubr.f32.vlgmr.msra.gmra.mrb[2].mxu0 %v311_v13  ;;  %464 = vmatmul.mubr.f32.vlgmr.msra.gmra.mrb[2].mxu1 %v311_v13 }
 0x145   :  { %1751 = vmatpush1.bf16.msra.mxu0 %v2379_v8  ;;  %1783 = vmatpush1.bf16.msra.mxu1 %v2389_v18 }
 0x146   :  { %1753 = vmatprep.subr.bf16.mxu0 %v2381_v9  ;;  %1785 = vmatprep.subr.bf16.mxu1 %v2395_v26 }
 0x147   :  { %573 = vmatprep.mubr.f32.mxu0 %v2321_v0  ;;  %644 = vmatprep.mubr.f32.mxu1 %v2321_v0 }
 0x149   :  { %1755 = vmatpush1.bf16.msra.mxu0 %v2385_v16  ;;  %1787 = vmatpush1.bf16.msra.mxu1 %v2398_v30 }
 0x14a   :  { %1757 = vmatprep.subr.bf16.mxu0 %v2392_v22  ;;  %1789 = vmatprep.subr.bf16.mxu1 %v2407_v39 }
 0x14d   :  { %1759 = vmatpush1.bf16.msra.mxu0 %v2401_v32  ;;  %1791 = vmatpush1.bf16.msra.mxu1 %v2410_v44 }
 0x14e   :  { %1761 = vmatprep.subr.bf16.mxu0 %v2405_v36  ;;  %1793 = vmatprep.subr.bf16.mxu1 %v2416_v48 }
 0x151   :  { %1763 = vmatpush1.bf16.msra.mxu0 %v2413_v46  ;;  %1795 = vmatpush1.bf16.msra.mxu1 %v2422_v57 }
 0x152   :  { %1765 = vmatprep.subr.bf16.mxu0 %v2419_v51  ;;  %1797 = vmatprep.subr.bf16.mxu1 %v2428_v60 }
 0x155   :  { %1767 = vmatpush1.bf16.msra.mxu0 %v2425_v58  ;;  %1799 = vmatpush1.bf16.msra.mxu1 %v2434_v7 }
 0x156   :  { %1769 = vmatprep.subr.bf16.mxu0 %v2431_v63  ;;  %1801 = vmatprep.subr.bf16.mxu1 %v2440_v12 }
 0x159   :  { %1771 = vmatpush1.bf16.msra.mxu0 %v2437_v10  ;;  %1803 = vmatpush1.bf16.msra.mxu1 %v2446_v25 }
 0x15a   :  { %1773 = vmatprep.subr.bf16.mxu0 %v2443_v15  ;;  %1805 = vmatprep.subr.bf16.mxu1 %v2452_v29 }
 0x15d   :  { %1775 = vmatpush1.bf16.msra.mxu0 %v2449_v27  ;;  %1807 = vmatpush1.bf16.msra.mxu1 %v2458_v40 }
 0x15e   :  { %1777 = vmatprep.subr.bf16.mxu0 %v2455_v34  ;;  %1809 = vmatprep.subr.bf16.mxu1 %v2464_v42 }
 0x161   :  { %1779 = vmatpush1.bf16.msra.mxu0 %v2461_v41  ;;  %1811 = vmatpush1.bf16.msra.mxu1 %v2468_v47 }
 0x162   :  { %1813 = vmatprep.subr.bf16.mxu0 %v2377_v4  ;;  %1845 = vmatprep.subr.bf16.mxu1 %v2387_v17 }
 0x217   :  { %v394_v28 = vpop.f32.mrb[2].mxu0  ;;  %v465_v31 = vpop.f32.mrb[2].mxu1 }
 0x218   :  { %v470_v33 = vadd.f32 %v394_v28, %v324_v21  ;;  %v396_v37 = vpop.f32.mrb[3].mxu0  ;;  %v467_v38 = vpop.f32.mrb[3].mxu1  ;;  %v472_v52 = vadd.f32 %v465_v31, %v326_v35  ;;  %v502_v35 = vld [vmem:[#allocation4 + $0x48] sm:$0xff] }
 0x219   :  { %v471_v43 = vadd.f32 %v396_v37, %v325_v24  ;;  %v473_v54 = vadd.f32 %v467_v38, %v327_v53  ;;  %v503_v38 = vld [vmem:[#allocation4 + $0x50] sm:$0xff] }
 0x21a   :  { %v474_v49 = vmul.f32 0.5, %v470_v33 }
 0x21b   :  { %v478_v50 = vmul.f32 0.5, %v471_v43  ;;  %v482_v55 = vmul.f32 0.5, %v473_v54  ;;  %v506_v43 = vadd.f32 %v502_v35, %v2516_v61 }
 0x21c   :  { %2151 = vtanh.f32 %v474_v49 }
 0x21d   :  { %2153 = vtanh.f32 %v478_v50 }
 0x21e   :  { %2155 = vtanh.f32 %v472_v52  ;;  %v507_v52 = vadd.f32 %v503_v38, %v2518_v1 }
 0x21f   :  { %2157 = vtanh.f32 %v482_v55 }
 0x226   :  { %v2152_v59 = vpop.eup %2151 }
 0x227   :  { %v2154_v62 = vpop.eup %2153  ;;  %v476_v3 = vmul.f32 0.5, %v2152_v59  ;;  %v504_v59 = vld [vmem:[#allocation4 + $0x58] sm:$0xff] }
 0x228   :  { %v480_v5 = vmul.f32 0.5, %v2154_v62  ;;  %v2156_v11 = vpop.eup %2155 }
 0x229   :  { %v477_v6 = vadd.f32 0.5, %v476_v3  ;;  %v2158_v23 = vpop.eup %2157 }
 0x22a   :  { %v481_v13 = vadd.f32 0.5, %v480_v5  ;;  %v484_v24 = vmul.f32 0.5, %v2158_v23 }
 0x22b   :  { %v488_v14 = vmul.f32 %v2156_v11, %v477_v6  ;;  %v508_v6 = vadd.f32 %v504_v59, %v2523_v20 }
 0x22c   :  { %v487_v19 = vmul.f32 %v481_v13, %v2526_v2  ;;  %v485_v28 = vadd.f32 0.5, %v484_v24  ;;  %v501_v2 = vld [vmem:[#allocation4 + $0x40] sm:$0xff] }
 0x22d   :  { %v505_v37 = vadd.f32 %v501_v2, %v2514_v56 }
 0x22e   :  { %v2568_v21 = vadd.f32 %v488_v14, %v487_v19 }
 0x230   :  { %2159 = vtanh.f32 %v2568_v21 }
 0x23a   :  { %v2160_v31 = vpop.eup %2159 }
 0x23b   :  { %v491_v33 = vmul.f32 %v2160_v31, %v485_v28 }
 0x23d   :  { %493 = vst [vmem:[#allocation9 + $0x8] sm:$0xff] %v491_v33  ;;  %574 = vmatmul.mubr.f32.vlgmr.msra.gmra.mrb[4].mxu0 %v491_v33  ;;  %645 = vmatmul.mubr.f32.vlgmr.msra.gmra.mrb[4].mxu1 %v491_v33 }
 0x23e   :  { %1815 = vmatpush1.bf16.msra.mxu0 %v2379_v8  ;;  %1847 = vmatpush1.bf16.msra.mxu1 %v2389_v18 }
 0x23f   :  { %1817 = vmatprep.subr.bf16.mxu0 %v2381_v9  ;;  %1849 = vmatprep.subr.bf16.mxu1 %v2395_v26 }
 0x240   :  { %754 = vmatprep.mubr.f32.mxu0 %v2321_v0  ;;  %825 = vmatprep.mubr.f32.mxu1 %v2321_v0 }
 0x242   :  { %1819 = vmatpush1.bf16.msra.mxu0 %v2385_v16  ;;  %1851 = vmatpush1.bf16.msra.mxu1 %v2398_v30 }
 0x243   :  { %1821 = vmatprep.subr.bf16.mxu0 %v2392_v22  ;;  %1853 = vmatprep.subr.bf16.mxu1 %v2407_v39 }
 0x246   :  { %1823 = vmatpush1.bf16.msra.mxu0 %v2401_v32  ;;  %1855 = vmatpush1.bf16.msra.mxu1 %v2410_v44 }
 0x247   :  { %1825 = vmatprep.subr.bf16.mxu0 %v2405_v36  ;;  %1857 = vmatprep.subr.bf16.mxu1 %v2416_v48 }
 0x24a   :  { %1827 = vmatpush1.bf16.msra.mxu0 %v2413_v46  ;;  %1859 = vmatpush1.bf16.msra.mxu1 %v2422_v57 }
 0x24b   :  { %1829 = vmatprep.subr.bf16.mxu0 %v2419_v51  ;;  %1861 = vmatprep.subr.bf16.mxu1 %v2428_v60 }
 0x24e   :  { %1831 = vmatpush1.bf16.msra.mxu0 %v2425_v58  ;;  %1863 = vmatpush1.bf16.msra.mxu1 %v2434_v7 }
 0x24f   :  { %1833 = vmatprep.subr.bf16.mxu0 %v2431_v63  ;;  %1865 = vmatprep.subr.bf16.mxu1 %v2440_v12 }
 0x252   :  { %1835 = vmatpush1.bf16.msra.mxu0 %v2437_v10  ;;  %1867 = vmatpush1.bf16.msra.mxu1 %v2446_v25 }
 0x253   :  { %1837 = vmatprep.subr.bf16.mxu0 %v2443_v15  ;;  %1869 = vmatprep.subr.bf16.mxu1 %v2452_v29 }
 0x256   :  { %1839 = vmatpush1.bf16.msra.mxu0 %v2449_v27  ;;  %1871 = vmatpush1.bf16.msra.mxu1 %v2458_v40 }
 0x257   :  { %1841 = vmatprep.subr.bf16.mxu0 %v2455_v34  ;;  %1873 = vmatprep.subr.bf16.mxu1 %v2464_v42 }
 0x25a   :  { %1843 = vmatpush1.bf16.msra.mxu0 %v2461_v41  ;;  %1875 = vmatpush1.bf16.msra.mxu1 %v2468_v47 }
 0x25b   :  { %1877 = vmatprep.subr.bf16.mxu0 %v2377_v4  ;;  %1909 = vmatprep.subr.bf16.mxu1 %v2387_v17 }
 0x310   :  { %v575_v45 = vpop.f32.mrb[4].mxu0  ;;  %v646_v49 = vpop.f32.mrb[4].mxu1 }
 0x311   :  { %v651_v50 = vadd.f32 %v575_v45, %v505_v37  ;;  %v577_v53 = vpop.f32.mrb[5].mxu0  ;;  %v648_v54 = vpop.f32.mrb[5].mxu1  ;;  %v653_v5 = vadd.f32 %v646_v49, %v507_v52  ;;  %v683_v52 = vld [vmem:[#allocation4 + $0x68] sm:$0xff] }
 0x312   :  { %v652_v55 = vadd.f32 %v577_v53, %v506_v43  ;;  %v654_v11 = vadd.f32 %v648_v54, %v508_v6  ;;  %v684_v54 = vld [vmem:[#allocation4 + $0x70] sm:$0xff] }
 0x313   :  { %v655_v62 = vmul.f32 0.5, %v651_v50 }
 0x314   :  { %v659_v3 = vmul.f32 0.5, %v652_v55  ;;  %v663_v13 = vmul.f32 0.5, %v654_v11  ;;  %v687_v55 = vadd.f32 %v683_v52, %v2516_v61 }
 0x315   :  { %2161 = vtanh.f32 %v655_v62 }
 0x316   :  { %2163 = vtanh.f32 %v659_v3 }
 0x317   :  { %2165 = vtanh.f32 %v653_v5  ;;  %v688_v5 = vadd.f32 %v684_v54, %v2518_v1 }
 0x318   :  { %2167 = vtanh.f32 %v663_v13 }
 0x31f   :  { %v2162_v14 = vpop.eup %2161 }
 0x320   :  { %v2164_v19 = vpop.eup %2163  ;;  %v657_v23 = vmul.f32 0.5, %v2162_v14  ;;  %v685_v14 = vld [vmem:[#allocation4 + $0x78] sm:$0xff] }
 0x321   :  { %v661_v24 = vmul.f32 0.5, %v2164_v19  ;;  %v2166_v31 = vpop.eup %2165 }
 0x322   :  { %v658_v28 = vadd.f32 0.5, %v657_v23  ;;  %v2168_v38 = vpop.eup %2167 }
 0x323   :  { %v662_v33 = vadd.f32 0.5, %v661_v24  ;;  %v665_v43 = vmul.f32 0.5, %v2168_v38 }
 0x324   :  { %v669_v2 = vmul.f32 %v2166_v31, %v658_v28  ;;  %v689_v28 = vadd.f32 %v685_v14, %v2523_v20 }
 0x325   :  { %v668_v35 = vmul.f32 %v662_v33, %v2568_v21  ;;  %v666_v45 = vadd.f32 0.5, %v665_v43  ;;  %v682_v21 = vld [vmem:[#allocation4 + $0x60] sm:$0xff] }
 0x326   :  { %v686_v53 = vadd.f32 %v682_v21, %v2514_v56 }
 0x327   :  { %v2610_v37 = vadd.f32 %v669_v2, %v668_v35 }
 0x329   :  { %2169 = vtanh.f32 %v2610_v37 }
 0x333   :  { %v2170_v49 = vpop.eup %2169 }
 0x334   :  { %v672_v50 = vmul.f32 %v2170_v49, %v666_v45 }
 0x336   :  { %674 = vst [vmem:[#allocation9 + $0x10] sm:$0xff] %v672_v50  ;;  %755 = vmatmul.mubr.f32.vlgmr.msra.gmra.mrb[6].mxu0 %v672_v50  ;;  %826 = vmatmul.mubr.f32.vlgmr.msra.gmra.mrb[6].mxu1 %v672_v50 }
 0x337   :  { %1879 = vmatpush1.bf16.msra.mxu0 %v2379_v8  ;;  %1911 = vmatpush1.bf16.msra.mxu1 %v2389_v18 }
 0x338   :  { %1881 = vmatprep.subr.bf16.mxu0 %v2381_v9  ;;  %1913 = vmatprep.subr.bf16.mxu1 %v2395_v26 }
 0x339   :  { %935 = vmatprep.mubr.f32.mxu0 %v2321_v0  ;;  %1006 = vmatprep.mubr.f32.mxu1 %v2321_v0 }
 0x33b   :  { %1883 = vmatpush1.bf16.msra.mxu0 %v2385_v16  ;;  %1915 = vmatpush1.bf16.msra.mxu1 %v2398_v30 }
 0x33c   :  { %1885 = vmatprep.subr.bf16.mxu0 %v2392_v22  ;;  %1917 = vmatprep.subr.bf16.mxu1 %v2407_v39 }
 0x33f   :  { %1887 = vmatpush1.bf16.msra.mxu0 %v2401_v32  ;;  %1919 = vmatpush1.bf16.msra.mxu1 %v2410_v44 }
 0x340   :  { %1889 = vmatprep.subr.bf16.mxu0 %v2405_v36  ;;  %1921 = vmatprep.subr.bf16.mxu1 %v2416_v48 }
 0x343   :  { %1891 = vmatpush1.bf16.msra.mxu0 %v2413_v46  ;;  %1923 = vmatpush1.bf16.msra.mxu1 %v2422_v57 }
 0x344   :  { %1893 = vmatprep.subr.bf16.mxu0 %v2419_v51  ;;  %1925 = vmatprep.subr.bf16.mxu1 %v2428_v60 }
 0x347   :  { %1895 = vmatpush1.bf16.msra.mxu0 %v2425_v58  ;;  %1927 = vmatpush1.bf16.msra.mxu1 %v2434_v7 }
 0x348   :  { %1897 = vmatprep.subr.bf16.mxu0 %v2431_v63  ;;  %1929 = vmatprep.subr.bf16.mxu1 %v2440_v12 }
 0x34b   :  { %1899 = vmatpush1.bf16.msra.mxu0 %v2437_v10  ;;  %1931 = vmatpush1.bf16.msra.mxu1 %v2446_v25 }
 0x34c   :  { %1901 = vmatprep.subr.bf16.mxu0 %v2443_v15  ;;  %1933 = vmatprep.subr.bf16.mxu1 %v2452_v29 }
 0x34f   :  { %1903 = vmatpush1.bf16.msra.mxu0 %v2449_v27  ;;  %1935 = vmatpush1.bf16.msra.mxu1 %v2458_v40 }
 0x350   :  { %1905 = vmatprep.subr.bf16.mxu0 %v2455_v34  ;;  %1937 = vmatprep.subr.bf16.mxu1 %v2464_v42 }
 0x353   :  { %1907 = vmatpush1.bf16.msra.mxu0 %v2461_v41  ;;  %1939 = vmatpush1.bf16.msra.mxu1 %v2468_v47 }
 0x354   :  { %1941 = vmatprep.subr.bf16.mxu0 %v2377_v4  ;;  %1973 = vmatprep.subr.bf16.mxu1 %v2387_v17 }
 0x409   :  { %v756_v59 = vpop.f32.mrb[6].mxu0  ;;  %v827_v62 = vpop.f32.mrb[6].mxu1 }
 0x40a   :  { %v832_v3 = vadd.f32 %v756_v59, %v686_v53  ;;  %v758_v6 = vpop.f32.mrb[7].mxu0  ;;  %v829_v11 = vpop.f32.mrb[7].mxu1  ;;  %v834_v24 = vadd.f32 %v827_v62, %v688_v5  ;;  %v864_v5 = vld [vmem:[#allocation4 + $0x88] sm:$0xff] }
 0x40b   :  { %v833_v13 = vadd.f32 %v758_v6, %v687_v55  ;;  %v835_v31 = vadd.f32 %v829_v11, %v689_v28  ;;  %v865_v11 = vld [vmem:[#allocation4 + $0x90] sm:$0xff] }
 0x40c   :  { %v836_v19 = vmul.f32 0.5, %v832_v3 }
 0x40d   :  { %v840_v23 = vmul.f32 0.5, %v833_v13  ;;  %v844_v33 = vmul.f32 0.5, %v835_v31  ;;  %v868_v13 = vadd.f32 %v864_v5, %v2516_v61 }
 0x40e   :  { %2171 = vtanh.f32 %v836_v19 }
 0x40f   :  { %2173 = vtanh.f32 %v840_v23 }
 0x410   :  { %2175 = vtanh.f32 %v834_v24  ;;  %v869_v24 = vadd.f32 %v865_v11, %v2518_v1 }
 0x411   :  { %2177 = vtanh.f32 %v844_v33 }
 0x418   :  { %v2172_v2 = vpop.eup %2171 }
 0x419   :  { %v2174_v35 = vpop.eup %2173  ;;  %v838_v38 = vmul.f32 0.5, %v2172_v2  ;;  %v866_v2 = vld [vmem:[#allocation4 + $0x98] sm:$0xff] }
 0x41a   :  { %v842_v43 = vmul.f32 0.5, %v2174_v35  ;;  %v2176_v49 = vpop.eup %2175 }
 0x41b   :  { %v839_v45 = vadd.f32 0.5, %v838_v38  ;;  %v2178_v54 = vpop.eup %2177 }
 0x41c   :  { %v843_v50 = vadd.f32 0.5, %v842_v43  ;;  %v846_v55 = vmul.f32 0.5, %v2178_v54 }
 0x41d   :  { %v850_v21 = vmul.f32 %v2176_v49, %v839_v45  ;;  %v870_v45 = vadd.f32 %v866_v2, %v2523_v20 }
 0x41e   :  { %v849_v52 = vmul.f32 %v843_v50, %v2610_v37  ;;  %v847_v59 = vadd.f32 0.5, %v846_v55  ;;  %v863_v37 = vld [vmem:[#allocation4 + $0x80] sm:$0xff] }
 0x41f   :  { %v867_v6 = vadd.f32 %v863_v37, %v2514_v56 }
 0x420   :  { %v2652_v53 = vadd.f32 %v850_v21, %v849_v52 }
 0x422   :  { %2179 = vtanh.f32 %v2652_v53 }
 0x42c   :  { %v2180_v62 = vpop.eup %2179 }
 0x42d   :  { %v853_v3 = vmul.f32 %v2180_v62, %v847_v59 }
 0x42f   :  { %855 = vst [vmem:[#allocation9 + $0x18] sm:$0xff] %v853_v3  ;;  %936 = vmatmul.mubr.f32.vlgmr.msra.gmra.mrb[8].mxu0 %v853_v3  ;;  %1007 = vmatmul.mubr.f32.vlgmr.msra.gmra.mrb[8].mxu1 %v853_v3 }
 0x430   :  { %1943 = vmatpush1.bf16.msra.mxu0 %v2379_v8  ;;  %1975 = vmatpush1.bf16.msra.mxu1 %v2389_v18 }
 0x431   :  { %1945 = vmatprep.subr.bf16.mxu0 %v2381_v9  ;;  %1977 = vmatprep.subr.bf16.mxu1 %v2395_v26 }
 0x432   :  { %1116 = vmatprep.mubr.f32.mxu0 %v2321_v0  ;;  %1187 = vmatprep.mubr.f32.mxu1 %v2321_v0 }
 0x434   :  { %1947 = vmatpush1.bf16.msra.mxu0 %v2385_v16  ;;  %1979 = vmatpush1.bf16.msra.mxu1 %v2398_v30 }
 0x435   :  { %1949 = vmatprep.subr.bf16.mxu0 %v2392_v22  ;;  %1981 = vmatprep.subr.bf16.mxu1 %v2407_v39 }
 0x438   :  { %1951 = vmatpush1.bf16.msra.mxu0 %v2401_v32  ;;  %1983 = vmatpush1.bf16.msra.mxu1 %v2410_v44 }
 0x439   :  { %1953 = vmatprep.subr.bf16.mxu0 %v2405_v36  ;;  %1985 = vmatprep.subr.bf16.mxu1 %v2416_v48 }
 0x43c   :  { %1955 = vmatpush1.bf16.msra.mxu0 %v2413_v46  ;;  %1987 = vmatpush1.bf16.msra.mxu1 %v2422_v57 }
 0x43d   :  { %1957 = vmatprep.subr.bf16.mxu0 %v2419_v51  ;;  %1989 = vmatprep.subr.bf16.mxu1 %v2428_v60 }
 0x440   :  { %1959 = vmatpush1.bf16.msra.mxu0 %v2425_v58  ;;  %1991 = vmatpush1.bf16.msra.mxu1 %v2434_v7 }
 0x441   :  { %1961 = vmatprep.subr.bf16.mxu0 %v2431_v63  ;;  %1993 = vmatprep.subr.bf16.mxu1 %v2440_v12 }
 0x444   :  { %1963 = vmatpush1.bf16.msra.mxu0 %v2437_v10  ;;  %1995 = vmatpush1.bf16.msra.mxu1 %v2446_v25 }
 0x445   :  { %1965 = vmatprep.subr.bf16.mxu0 %v2443_v15  ;;  %1997 = vmatprep.subr.bf16.mxu1 %v2452_v29 }
 0x448   :  { %1967 = vmatpush1.bf16.msra.mxu0 %v2449_v27  ;;  %1999 = vmatpush1.bf16.msra.mxu1 %v2458_v40 }
 0x449   :  { %1969 = vmatprep.subr.bf16.mxu0 %v2455_v34  ;;  %2001 = vmatprep.subr.bf16.mxu1 %v2464_v42 }
 0x44c   :  { %1971 = vmatpush1.bf16.msra.mxu0 %v2461_v41  ;;  %2003 = vmatpush1.bf16.msra.mxu1 %v2468_v47 }
 0x44d   :  { %2005 = vmatprep.subr.bf16.mxu0 %v2377_v4  ;;  %2037 = vmatprep.subr.bf16.mxu1 %v2387_v17 }
 0x502   :  { %v937_v14 = vpop.f32.mrb[8].mxu0  ;;  %v1008_v19 = vpop.f32.mrb[8].mxu1 }
 0x503   :  { %v1013_v23 = vadd.f32 %v937_v14, %v867_v6  ;;  %v939_v28 = vpop.f32.mrb[9].mxu0  ;;  %v1010_v31 = vpop.f32.mrb[9].mxu1  ;;  %v1015_v43 = vadd.f32 %v1008_v19, %v869_v24  ;;  %v1045_v24 = vld [vmem:[#allocation4 + $0xa8] sm:$0xff] }
 0x504   :  { %v1014_v33 = vadd.f32 %v939_v28, %v868_v13  ;;  %v1016_v49 = vadd.f32 %v1010_v31, %v870_v45  ;;  %v1046_v31 = vld [vmem:[#allocation4 + $0xb0] sm:$0xff] }
 0x505   :  { %v1017_v35 = vmul.f32 0.5, %v1013_v23 }
 0x506   :  { %v1021_v38 = vmul.f32 0.5, %v1014_v33  ;;  %v1025_v50 = vmul.f32 0.5, %v1016_v49  ;;  %v1049_v33 = vadd.f32 %v1045_v24, %v2516_v61 }
 0x507   :  { %2181 = vtanh.f32 %v1017_v35 }
 0x508   :  { %2183 = vtanh.f32 %v1021_v38 }
 0x509   :  { %2185 = vtanh.f32 %v1015_v43  ;;  %v1050_v43 = vadd.f32 %v1046_v31, %v2518_v1 }
 0x50a   :  { %2187 = vtanh.f32 %v1025_v50 }
 0x511   :  { %v2182_v21 = vpop.eup %2181 }
 0x512   :  { %v2184_v52 = vpop.eup %2183  ;;  %v1019_v54 = vmul.f32 0.5, %v2182_v21  ;;  %v1047_v21 = vld [vmem:[#allocation4 + $0xb8] sm:$0xff] }
 0x513   :  { %v1023_v55 = vmul.f32 0.5, %v2184_v52  ;;  %v2186_v62 = vpop.eup %2185 }
 0x514   :  { %v1020_v59 = vadd.f32 0.5, %v1019_v54  ;;  %v2188_v11 = vpop.eup %2187  ;;  %v1051_v54 = vadd.f32 %v1047_v21, %v2523_v20 }
 0x515   :  { %v1024_v3 = vadd.f32 0.5, %v1023_v55  ;;  %v1027_v13 = vmul.f32 0.5, %v2188_v11 }
 0x516   :  { %v1031_v37 = vmul.f32 %v2186_v62, %v1020_v59 }
 0x517   :  { %v1030_v5 = vmul.f32 %v1024_v3, %v2652_v53  ;;  %v1028_v14 = vadd.f32 0.5, %v1027_v13  ;;  %v1044_v53 = vld [vmem:[#allocation4 + $0xa0] sm:$0xff] }
 0x518   :  { %v1048_v28 = vadd.f32 %v1044_v53, %v2514_v56 }
 0x519   :  { %v2694_v6 = vadd.f32 %v1031_v37, %v1030_v5 }
 0x51b   :  { %2189 = vtanh.f32 %v2694_v6 }
 0x525   :  { %v2190_v19 = vpop.eup %2189 }
 0x526   :  { %v1034_v23 = vmul.f32 %v2190_v19, %v1028_v14 }
 0x528   :  { %1036 = vst [vmem:[#allocation9 + $0x20] sm:$0xff] %v1034_v23  ;;  %1117 = vmatmul.mubr.f32.vlgmr.msra.gmra.mrb[10].mxu0 %v1034_v23  ;;  %1188 = vmatmul.mubr.f32.vlgmr.msra.gmra.mrb[10].mxu1 %v1034_v23 }
 0x529   :  { %2007 = vmatpush1.bf16.msra.mxu0 %v2379_v8  ;;  %2039 = vmatpush1.bf16.msra.mxu1 %v2389_v18 }
 0x52a   :  { %2009 = vmatprep.subr.bf16.mxu0 %v2381_v9  ;;  %2041 = vmatprep.subr.bf16.mxu1 %v2395_v26 }
 0x52b   :  { %1297 = vmatprep.mubr.f32.mxu0 %v2321_v0  ;;  %1368 = vmatprep.mubr.f32.mxu1 %v2321_v0 }
 0x52d   :  { %2011 = vmatpush1.bf16.msra.mxu0 %v2385_v16  ;;  %2043 = vmatpush1.bf16.msra.mxu1 %v2398_v30 }
 0x52e   :  { %2013 = vmatprep.subr.bf16.mxu0 %v2392_v22  ;;  %2045 = vmatprep.subr.bf16.mxu1 %v2407_v39 }
 0x531   :  { %2015 = vmatpush1.bf16.msra.mxu0 %v2401_v32  ;;  %2047 = vmatpush1.bf16.msra.mxu1 %v2410_v44 }
 0x532   :  { %2017 = vmatprep.subr.bf16.mxu0 %v2405_v36  ;;  %2049 = vmatprep.subr.bf16.mxu1 %v2416_v48 }
 0x535   :  { %2019 = vmatpush1.bf16.msra.mxu0 %v2413_v46  ;;  %2051 = vmatpush1.bf16.msra.mxu1 %v2422_v57 }
 0x536   :  { %2021 = vmatprep.subr.bf16.mxu0 %v2419_v51  ;;  %2053 = vmatprep.subr.bf16.mxu1 %v2428_v60 }
 0x539   :  { %2023 = vmatpush1.bf16.msra.mxu0 %v2425_v58  ;;  %2055 = vmatpush1.bf16.msra.mxu1 %v2434_v7 }
 0x53a   :  { %2025 = vmatprep.subr.bf16.mxu0 %v2431_v63  ;;  %2057 = vmatprep.subr.bf16.mxu1 %v2440_v12 }
 0x53d   :  { %2027 = vmatpush1.bf16.msra.mxu0 %v2437_v10  ;;  %2059 = vmatpush1.bf16.msra.mxu1 %v2446_v25 }
 0x53e   :  { %2029 = vmatprep.subr.bf16.mxu0 %v2443_v15  ;;  %2061 = vmatprep.subr.bf16.mxu1 %v2452_v29 }
 0x541   :  { %2031 = vmatpush1.bf16.msra.mxu0 %v2449_v27  ;;  %2063 = vmatpush1.bf16.msra.mxu1 %v2458_v40 }
 0x542   :  { %2033 = vmatprep.subr.bf16.mxu0 %v2455_v34  ;;  %2065 = vmatprep.subr.bf16.mxu1 %v2464_v42 }
 0x545   :  { %2035 = vmatpush1.bf16.msra.mxu0 %v2461_v41  ;;  %2067 = vmatpush1.bf16.msra.mxu1 %v2468_v47 }
 0x546   :  { %2069 = vmatprep.subr.bf16.mxu0 %v2377_v4  ;;  %2101 = vmatprep.subr.bf16.mxu1 %v2387_v17 }
 0x5fb   :  { %v1118_v2 = vpop.f32.mrb[10].mxu0  ;;  %v1189_v35 = vpop.f32.mrb[10].mxu1 }
 0x5fc   :  { %v1194_v38 = vadd.f32 %v1118_v2, %v1048_v28  ;;  %v1120_v45 = vpop.f32.mrb[11].mxu0  ;;  %v1191_v49 = vpop.f32.mrb[11].mxu1  ;;  %v1196_v17 = vadd.f32 %v1189_v35, %v1050_v43  ;;  %v1406_v43 = vld [vmem:[#allocation4 + $0xe0] sm:$0xff] }
 0x5fd   :  { %v1195_v50 = vadd.f32 %v1120_v45, %v1049_v33  ;;  %v1197_v55 = vadd.f32 %v1191_v49, %v1051_v54  ;;  %v1407_v45 = vld [vmem:[#allocation4 + $0xe8] sm:$0xff]  ;;  %v1410_v49 = vadd.f32 %v1406_v43, %v2514_v56 }
 0x5fe   :  { %v1198_v52 = vmul.f32 0.5, %v1194_v38  ;;  %v1411_v21 = vadd.f32 %v1407_v45, %v2516_v61 }
 0x5ff   :  { %v1202_v4 = vmul.f32 0.5, %v1195_v50  ;;  %v1206_v59 = vmul.f32 0.5, %v1197_v55  ;;  %v1408_v50 = vld [vmem:[#allocation4 + $0xf0] sm:$0xff] }
 0x600   :  { %2191 = vtanh.f32 %v1198_v52  ;;  %v1412_v54 = vadd.f32 %v1408_v50, %v2518_v1 }
 0x601   :  { %2193 = vtanh.f32 %v1202_v4 }
 0x602   :  { %2195 = vtanh.f32 %v1196_v17 }
 0x603   :  { %2197 = vtanh.f32 %v1206_v59 }
 0x60a   :  { %v2192_v62 = vpop.eup %2191 }
 0x60b   :  { %v2194_v3 = vpop.eup %2193  ;;  %v1200_v37 = vmul.f32 0.5, %v2192_v62 }
 0x60c   :  { %v1204_v5 = vmul.f32 0.5, %v2194_v3  ;;  %v2196_v13 = vpop.eup %2195  ;;  %v1409_v3 = vld [vmem:[#allocation4 + $0xf8] sm:$0xff] }
 0x60d   :  { %v1201_v11 = vadd.f32 0.5, %v1200_v37  ;;  %v2198_v24 = vpop.eup %2197 }
 0x60e   :  { %v1205_v14 = vadd.f32 0.5, %v1204_v5  ;;  %v1208_v28 = vmul.f32 0.5, %v2198_v24 }
 0x60f   :  { %v1212_v19 = vmul.f32 %v2196_v13, %v1201_v11  ;;  %v1413_v13 = vadd.f32 %v1409_v3, %v2523_v20 }
 0x610   :  { %v1211_v23 = vmul.f32 %v1205_v14, %v2694_v6  ;;  %v1209_v31 = vadd.f32 0.5, %v1208_v28 }
 0x612   :  { %v2736_v53 = vadd.f32 %v1212_v19, %v1211_v23 }
 0x614   :  { %2199 = vtanh.f32 %v2736_v53 }
 0x61e   :  { %v2200_v33 = vpop.eup %2199 }
 0x61f   :  { %v1215_v2 = vmul.f32 %v2200_v33, %v1209_v31 }
 0x621   :  { %1217 = vst [vmem:[#allocation9 + $0x28] sm:$0xff] %v1215_v2  ;;  %1298 = vmatmul.mubr.f32.vlgmr.msra.gmra.mrb[12].mxu0 %v1215_v2  ;;  %1369 = vmatmul.mubr.f32.vlgmr.msra.gmra.mrb[12].mxu1 %v1215_v2 }
 0x622   :  { %2071 = vmatpush1.bf16.msra.mxu0 %v2379_v8  ;;  %2103 = vmatpush1.bf16.msra.mxu1 %v2389_v18  ;;  %v1226_v8 = vld [vmem:[#allocation4 + $0xc8] sm:$0xff] }
 0x623   :  { %2073 = vmatprep.subr.bf16.mxu0 %v2381_v9  ;;  %2105 = vmatprep.subr.bf16.mxu1 %v2395_v26  ;;  %v1230_v18 = vadd.f32 %v1226_v8, %v2516_v61 }
 0x624   :  { %1478 = vmatprep.mubr.f32.mxu0 %v2321_v0  ;;  %1549 = vmatprep.mubr.f32.mxu1 %v2321_v0  ;;  %v1225_v0 = vld [vmem:[#allocation4 + $0xc0] sm:$0xff] }
 0x625   :  { %v1229_v9 = vadd.f32 %v1225_v0, %v2514_v56 }
 0x626   :  { %2075 = vmatpush1.bf16.msra.mxu0 %v2385_v16  ;;  %2107 = vmatpush1.bf16.msra.mxu1 %v2398_v30  ;;  %v1227_v16 = vld [vmem:[#allocation4 + $0xd0] sm:$0xff] }
 0x627   :  { %2077 = vmatprep.subr.bf16.mxu0 %v2392_v22  ;;  %2109 = vmatprep.subr.bf16.mxu1 %v2407_v39 }
 0x62a   :  { %2079 = vmatpush1.bf16.msra.mxu0 %v2401_v32  ;;  %2111 = vmatpush1.bf16.msra.mxu1 %v2410_v44  ;;  %v1231_v32 = vadd.f32 %v1227_v16, %v2518_v1 }
 0x62b   :  { %2081 = vmatprep.subr.bf16.mxu0 %v2405_v36  ;;  %2113 = vmatprep.subr.bf16.mxu1 %v2416_v48 }
 0x62e   :  { %2083 = vmatpush1.bf16.msra.mxu0 %v2413_v46  ;;  %2115 = vmatpush1.bf16.msra.mxu1 %v2422_v57  ;;  %v1228_v46 = vld [vmem:[#allocation4 + $0xd8] sm:$0xff] }
 0x62f   :  { %2085 = vmatprep.subr.bf16.mxu0 %v2419_v51  ;;  %2117 = vmatprep.subr.bf16.mxu1 %v2428_v60 }
 0x632   :  { %2087 = vmatpush1.bf16.msra.mxu0 %v2425_v58  ;;  %2119 = vmatpush1.bf16.msra.mxu1 %v2434_v7  ;;  %v1232_v58 = vadd.f32 %v1228_v46, %v2523_v20 }
 0x633   :  { %2089 = vmatprep.subr.bf16.mxu0 %v2431_v63  ;;  %2121 = vmatprep.subr.bf16.mxu1 %v2440_v12 }
 0x636   :  { %2091 = vmatpush1.bf16.msra.mxu0 %v2437_v10  ;;  %2123 = vmatpush1.bf16.msra.mxu1 %v2446_v25 }
 0x637   :  { %2093 = vmatprep.subr.bf16.mxu0 %v2443_v15  ;;  %2125 = vmatprep.subr.bf16.mxu1 %v2452_v29 }
 0x63a   :  { %2095 = vmatpush1.bf16.msra.mxu0 %v2449_v27  ;;  %2127 = vmatpush1.bf16.msra.mxu1 %v2458_v40 }
 0x63b   :  { %2097 = vmatprep.subr.bf16.mxu0 %v2455_v34  ;;  %2129 = vmatprep.subr.bf16.mxu1 %v2464_v42 }
 0x63e   :  { %2099 = vmatpush1.bf16.msra.mxu0 %v2461_v41  ;;  %2131 = vmatpush1.bf16.msra.mxu1 %v2468_v47 }
 0x6f4   :  { %v1299_v22 = vpop.f32.mrb[12].mxu0  ;;  %v1370_v26 = vpop.f32.mrb[12].mxu1 }
 0x6f5   :  { %v1375_v30 = vadd.f32 %v1299_v22, %v1229_v9  ;;  %v1301_v36 = vpop.f32.mrb[13].mxu0  ;;  %v1372_v39 = vpop.f32.mrb[13].mxu1  ;;  %v1377_v57 = vadd.f32 %v1370_v26, %v1231_v32 }
 0x6f6   :  { %v1376_v44 = vadd.f32 %v1301_v36, %v1230_v18  ;;  %v1378_v60 = vadd.f32 %v1372_v39, %v1232_v58 }
 0x6f7   :  { %v1379_v48 = vmul.f32 0.5, %v1375_v30 }
 0x6f8   :  { %v1383_v51 = vmul.f32 0.5, %v1376_v44  ;;  %v1387_v63 = vmul.f32 0.5, %v1378_v60 }
 0x6f9   :  { %2201 = vtanh.f32 %v1379_v48 }
 0x6fa   :  { %2203 = vtanh.f32 %v1383_v51 }
 0x6fb   :  { %2205 = vtanh.f32 %v1377_v57 }
 0x6fc   :  { %2207 = vtanh.f32 %v1387_v63 }
 0x703   :  { %v2202_v7 = vpop.eup %2201 }
 0x704   :  { %v2204_v10 = vpop.eup %2203  ;;  %v1381_v12 = vmul.f32 0.5, %v2202_v7 }
 0x705   :  { %v1385_v15 = vmul.f32 0.5, %v2204_v10  ;;  %v2206_v27 = vpop.eup %2205 }
 0x706   :  { %v1382_v25 = vadd.f32 0.5, %v1381_v12  ;;  %v2208_v42 = vpop.eup %2207 }
 0x707   :  { %v1386_v29 = vadd.f32 0.5, %v1385_v15  ;;  %v1389_v47 = vmul.f32 0.5, %v2208_v42 }
 0x708   :  { %v1393_v34 = vmul.f32 %v2206_v27, %v1382_v25 }
 0x709   :  { %v1392_v40 = vmul.f32 %v1386_v29, %v2736_v53  ;;  %v1390_v6 = vadd.f32 0.5, %v1389_v47 }
 0x70b   :  { %v1394_v41 = vadd.f32 %v1393_v34, %v1392_v40 }
 0x70d   :  { %2209 = vtanh.f32 %v1394_v41 }
 0x717   :  { %v2210_v35 = vpop.eup %2209 }
 0x718   :  { %v1396_v38 = vmul.f32 %v2210_v35, %v1390_v6 }
 0x71a   :  { %1398 = vst [vmem:[#allocation9 + $0x30] sm:$0xff] %v1396_v38  ;;  %1479 = vmatmul.mubr.f32.vlgmr.msra.gmra.mrb[14].mxu0 %v1396_v38  ;;  %1550 = vmatmul.mubr.f32.vlgmr.msra.gmra.mrb[14].mxu1 %v1396_v38 }
 0x7ed   :  { %v1480_v52 = vpop.f32.mrb[14].mxu0  ;;  %v1551_v4 = vpop.f32.mrb[14].mxu1 }
 0x7ee   :  { %v1556_v17 = vadd.f32 %v1480_v52, %v1410_v49  ;;  %v1482_v55 = vpop.f32.mrb[15].mxu0  ;;  %v1553_v59 = vpop.f32.mrb[15].mxu1  ;;  %v1558_v11 = vadd.f32 %v1551_v4, %v1412_v54 }
 0x7ef   :  { %v1557_v62 = vadd.f32 %v1482_v55, %v1411_v21  ;;  %v1559_v56 = vadd.f32 %v1553_v59, %v1413_v13 }
 0x7f0   :  { %v1560_v37 = vmul.f32 0.5, %v1556_v17 }
 0x7f1   :  { %v1564_v5 = vmul.f32 0.5, %v1557_v62  ;;  %v1568_v14 = vmul.f32 0.5, %v1559_v56 }
 0x7f2   :  { %2211 = vtanh.f32 %v1560_v37 }
 0x7f3   :  { %2213 = vtanh.f32 %v1564_v5 }
 0x7f4   :  { %2215 = vtanh.f32 %v1558_v11 }
 0x7f5   :  { %2217 = vtanh.f32 %v1568_v14 }
 0x7fc   :  { %v2212_v61 = vpop.eup %2211 }
 0x7fd   :  { %v2214_v19 = vpop.eup %2213  ;;  %v1562_v23 = vmul.f32 0.5, %v2212_v61 }
 0x7fe   :  { %v1566_v53 = vmul.f32 0.5, %v2214_v19  ;;  %v2216_v24 = vpop.eup %2215 }
 0x7ff   :  { %v1563_v1 = vadd.f32 0.5, %v1562_v23 }
 0x800   :  { %v1567_v28 = vadd.f32 0.5, %v1566_v53 }
 0x801   :  { %v1574_v31 = vmul.f32 %v2216_v24, %v1563_v1 }
 0x802   :  { %v1573_v33 = vmul.f32 %v1567_v28, %v1394_v41 }
 0x804   :  { %v1575_v2 = vadd.f32 %v1574_v31, %v1573_v33 }
 0x806   :  { %2219 = vtanh.f32 %v1575_v2  ;;  %1585 = vst [vmem:[#allocation10] sm:$0xff] %v1575_v2 }
 0x807   :  { %2276 = shalt.err (!%p2273_p6)
}
 0x808   :  { %s2277_s19 = scalar_lea.hbm %s2808_s4, 128 }
 0x809   :  { %p2278_p7 = scmp.ne.s32.totalorder %s2808_s4, %s2277_s19  ;;  %p2281_p8 = scmp.lt.u32.totalorder %s2277_s19, %s2808_s4 }
 0x80b   :  { %p2283_p9 = pnand %p2281_p8, %p2278_p7 }
 0x80d   :  { %2286 = shalt.err (!%p2283_p9)
}
 0x80e   :  { %1609 = dma.vmem_to_hbm [thread:$0]  %s1607_s15, 128, %s2808_s4, [#allocation11]   ;;  %v2218_v20 = vpop.eup %2217 }
 0x80f   :  { %v1570_v0 = vmul.f32 0.5, %v2218_v20  ;;  %s2323_s26 = smov [#allocation9]  }
 0x810   :  { %s1593_s27 = sshll.u32 %s2323_s26, 4  ;;  %v2220_v9 = vpop.eup %2219  ;;  %s1594_s27 = int_to_ptr.vmem [resolvable:$true] %s1593_s27 }
 0x811   :  { %v1571_v8 = vadd.f32 0.5, %v1570_v0  ;;  %s2287_s28 = scalar_lea.vmem %s1594_s27, 1024  ;;  %p2292_p11 = scmp.lt.s32.totalorder %s1594_s27, %s1594_s27 }
 0x812   :  { %p2288_p10 = scmp.ne.s32.totalorder %s1594_s27, %s2287_s28  ;;  %p2293_p12 = scmp.lt.s32.totalorder %s2287_s28, %s2287_s28 }
 0x813   :  { %v1577_v16 = vmul.f32 %v2220_v9, %v1571_v8 }
 0x814   :  { %p2294_p13 = por %p2293_p12, %p2292_p11 }
 0x815   :  { %1579 = vst [vmem:[#allocation9 + $0x38] sm:$0xff] %v1577_v16 }
 0x816   :  { %p2295_p0 = pnand %p2294_p13, %p2288_p10 }
 0x818   :  { %2298 = shalt.err (!%p2295_p0)
}
 0x819   :  { %s2299_s4 = scalar_lea.hbm %s2807_s3, 1024 }
 0x81a   :  { %p2300_p1 = scmp.ne.s32.totalorder %s2807_s3, %s2299_s4  ;;  %p2303_p2 = scmp.lt.u32.totalorder %s2299_s4, %s2807_s3 }
 0x81c   :  { %p2305_p3 = pnand %p2303_p2, %p2300_p1 }
 0x81e   :  { %2308 = shalt.err (!%p2305_p3)
}
 0x81f   :  { %s2324_s9 = smov 128   ;;  %s2325_s10 = smov 8  }
 0x820   :  { %1599 = dma.vmem_to_hbm [thread:$0]  %s1594_s27, 1024, %s2807_s3, [#allocation6], %s2324_s9, %s2324_s9, %s2325_s10  }
 0x821   :  { %2313 = dma.done.wait [#allocation6], 1024  }
 0x822   :  { %2314 = vsyncadd [#allocation6], 4294966272 }
 0x823   :  { %2315 = dma.done.wait [#allocation11], 128  }
 0x824   :  { %2316 = vsyncadd [#allocation11], 4294967168 }
 0x825   :  { %1616 = vsyncpa [#allocation5], 1 }
 0x826   :  { %1617 = vsyncpa [#allocation8], 1 }
 0x827   :  { %1618 = vsyncpa [#allocation6], 1 }
 0x828   :  { %1619 = vsyncpa [#allocation11], 1 }

</bundles_post_ra>
